<compile_context>
chip_gen: v5e
topology: v5e:2x2
jax: 0.10.0
libtpu: 0.0.40
codegen_flags: <defaults>
</compile_context>

<pallas_src>
import functools

import jax
import jax.numpy as jnp
from jax.experimental import pallas as pl
from jax.experimental.pallas import tpu as pltpu


# ----------------------------------------------------------------------------
# Tiling helper
# ----------------------------------------------------------------------------
def _pick_tile(m, target=1024):
    """Largest row tile <= target that divides m (multiple of 8); if that would
    be a single block, halve it so >= 2 grid blocks exist (megacore)."""
    best = None
    for t in range(min(target, m), 7, -1):
        if m % t == 0 and t % 8 == 0:
            best = t
            break
    if best is None:
        return m                      # no 8-aligned divisor: single full block
    if best == m and (m // 2) % 8 == 0:
        best = m // 2
    return best


# ----------------------------------------------------------------------------
# Kernel 1: fused [conv3x3(stride)+BN+ReLU || conv1x1(stride)+BN] as one matmul
# ----------------------------------------------------------------------------
def _stem_conv1_kernel(p_ref, w_ref, b_ref, o_ref, *, cout):
    # p: [tm, Kp] bf16, w: [Kp, 2*Cout] bf16 (BN folded), b: [1, 2*Cout] f32
    acc = jnp.dot(p_ref[...], w_ref[...], preferred_element_type=jnp.float32)
    y = acc + b_ref[...]
    # ReLU only on the first Cout lanes (conv3x3+BN+ReLU branch); shortcut
    # branch (lanes Cout..2*Cout) stays linear.  Lane-select keeps one store.
    lane = jax.lax.broadcasted_iota(jnp.int32, y.shape, 1)
    o_ref[...] = jnp.where(lane < cout, jnp.maximum(y, 0.0), y)


def stem_conv1(patches, w_comb, b_comb, cout):
    m, k = patches.shape
    n = w_comb.shape[1]
    tm = _pick_tile(m)
    assert m % tm == 0
    return pl.pallas_call(
        functools.partial(_stem_conv1_kernel, cout=cout),
        out_shape=jax.ShapeDtypeStruct((m, n), jnp.float32),
        grid=(m // tm,),
        in_specs=[pl.BlockSpec((tm, k), lambda i: (i, 0)),
                  pl.BlockSpec((k, n), lambda i: (0, 0)),
                  pl.BlockSpec((1, n), lambda i: (0, 0))],
        out_specs=pl.BlockSpec((tm, n), lambda i: (i, 0)),
        compiler_params=pltpu.CompilerParams(dimension_semantics=("parallel",)),
    )(patches, w_comb, b_comb.reshape(1, n))


# ----------------------------------------------------------------------------
# Kernel 2: 9-tap conv3x3(stride=1) + bias + shortcut + SE (pool/MLP/scale)
# ----------------------------------------------------------------------------
def _conv2_se_kernel(y_ref, s_ref, w_ref, b_ref, mask_ref, w1_ref, w2_ref,
                     o_ref, *, wp, inv_hw):
    # y: [(Ho+3)*wp, C] f32 (padded, flattened y1);  s: [Ho*wp, C] f32
    # w: [9, C, C] bf16;  b: [1, C] f32;  mask: [Ho*wp, 1] f32 (1 = valid col)
    # w1: [C, C//r] f32;  w2: [C//r, C] f32
    l2, c = o_ref.shape
    # Unrolled 9-tap accumulation; acc initialised from the first tap's dot.
    acc = jnp.dot(y_ref[0:l2, :].astype(jnp.bfloat16), w_ref[0],
                  preferred_element_type=jnp.float32)
    for k in range(1, 9):
        dy, dx = divmod(k, 3)
        off = dy * wp + dx            # wp % 8 == 0 -> dy*wp sublane aligned
        tap = y_ref[off:off + l2, :].astype(jnp.bfloat16)
        acc = acc + jnp.dot(tap, w_ref[k], preferred_element_type=jnp.float32)
    t = acc + b_ref[...] + s_ref[...]            # fused bias + shortcut add
    # Squeeze-Excitation, fully in VMEM (t never goes to HBM):
    pooled = jnp.sum(t * mask_ref[...], axis=0, keepdims=True) * inv_hw  # (1,C)
    h = jnp.maximum(jnp.dot(pooled, w1_ref[...],
                            preferred_element_type=jnp.float32), 0.0)
    z = jax.nn.sigmoid(jnp.dot(h, w2_ref[...],
                               preferred_element_type=jnp.float32))
    o_ref[...] = t * z                            # channel scaling


def stem_conv2_se(y1p, sp, w2, b2, mask, se_w1, se_w2, *, wp, inv_hw):
    b, l1, c = y1p.shape
    l2 = sp.shape[1]
    cr = se_w1.shape[1]
    return pl.pallas_call(
        functools.partial(_conv2_se_kernel, wp=wp, inv_hw=inv_hw),
        out_shape=jax.ShapeDtypeStruct((b, l2, c), jnp.float32),
        grid=(b,),
        in_specs=[pl.BlockSpec((None, l1, c), lambda i: (i, 0, 0)),
                  pl.BlockSpec((None, l2, c), lambda i: (i, 0, 0)),
                  pl.BlockSpec((9, c, c), lambda i: (0, 0, 0)),
                  pl.BlockSpec((1, c), lambda i: (0, 0)),
                  pl.BlockSpec((l2, 1), lambda i: (0, 0)),
                  pl.BlockSpec((c, cr), lambda i: (0, 0)),
                  pl.BlockSpec((cr, c), lambda i: (0, 0))],
        out_specs=pl.BlockSpec((None, l2, c), lambda i: (i, 0, 0)),
        compiler_params=pltpu.CompilerParams(dimension_semantics=("parallel",)),
    )(y1p, sp, w2, b2, mask, se_w1, se_w2)


# ----------------------------------------------------------------------------
# Plain-JAX glue (small im2col for the Cin-sized input, BN folding, params)
# ----------------------------------------------------------------------------
def im2col(x_nhwc, k, stride, pad, k_pad_to=None):
    """x: [B,H,W,C] -> [B*Ho*Wo, K] with tap order (dy,dx,c), K padded to k_pad_to."""
    B, H, W, C = x_nhwc.shape
    xp = jnp.pad(x_nhwc, ((0, 0), (pad, pad), (pad, pad), (0, 0)))
    Ho = (H + 2 * pad - k) // stride + 1
    Wo = (W + 2 * pad - k) // stride + 1
    cols = []
    for dy in range(k):
        for dx in range(k):
            cols.append(xp[:, dy:dy + stride * Ho:stride, dx:dx + stride * Wo:stride, :])
    kk = k * k * C
    if k_pad_to is not None and k_pad_to > kk:
        cols.append(jnp.zeros((B, Ho, Wo, k_pad_to - kk), x_nhwc.dtype))
        kk = k_pad_to
    patches = jnp.concatenate(cols, axis=-1)
    return patches.reshape(B * Ho * Wo, kk), Ho, Wo


def bn_fold(gamma, beta, mean, var, eps=1e-5):
    scale = gamma / jnp.sqrt(var + eps)
    shift = beta - mean * scale
    return scale, shift


def init_params(key, in_c, out_c, r=8):
    ks = jax.random.split(key, 11)
    p = {
        "w1": jax.random.normal(ks[0], (3, 3, in_c, out_c), jnp.float32) * 0.1,
        "b1": jax.random.normal(ks[1], (out_c,), jnp.float32) * 0.05,
        "bn1_gamma": 1.0 + 0.1 * jax.random.normal(ks[2], (out_c,), jnp.float32),
        "bn1_beta": 0.05 * jax.random.normal(ks[3], (out_c,), jnp.float32),
        "bn1_mean": 0.02 * jax.random.normal(ks[4], (out_c,), jnp.float32),
        "bn1_var": 1.0 + 0.1 * jnp.abs(jax.random.normal(ks[5], (out_c,), jnp.float32)),
        "w2": jax.random.normal(ks[6], (3, 3, out_c, out_c), jnp.float32) * 0.05,
        "b2": jax.random.normal(ks[7], (out_c,), jnp.float32) * 0.05,
        "w3": jax.random.normal(ks[8], (in_c, out_c), jnp.float32) * 0.1,
        "b3": jax.random.normal(ks[10], (out_c,), jnp.float32) * 0.05,
        "bn2_gamma": jnp.ones((out_c,), jnp.float32),
        "bn2_beta": jnp.zeros((out_c,), jnp.float32),
        "bn2_mean": jnp.zeros((out_c,), jnp.float32),
        "bn2_var": jnp.ones((out_c,), jnp.float32),
        "se_w1": jax.random.normal(ks[9], (out_c, out_c // r), jnp.float32) * 0.2,
        "se_w2": jax.random.normal(jax.random.fold_in(ks[9], 1),
                                   (out_c // r, out_c), jnp.float32) * 0.2,
    }
    return p


# ----------------------------------------------------------------------------
# Forward pass
# ----------------------------------------------------------------------------
def stem_block(x_nchw, params, stride):
    x = jnp.transpose(x_nchw, (0, 2, 3, 1)).astype(jnp.float32)    # NCHW -> NHWC
    B, H, W, cin = x.shape
    cout = params["w1"].shape[-1]

    sc1, sh1 = bn_fold(params["bn1_gamma"], params["bn1_beta"],
                       params["bn1_mean"], params["bn1_var"])
    sc2, sh2 = bn_fold(params["bn2_gamma"], params["bn2_beta"],
                       params["bn2_mean"], params["bn2_var"])

    # --- stage 1: fused [conv3x3(stride)+BN+ReLU || conv1x1(stride)+BN] -----
    K = 9 * cin
    Kp = ((K + 15) // 16) * 16                      # bf16 sublane pack of 16
    patches, Ho, Wo = im2col(x.astype(jnp.bfloat16), 3, stride, 1, k_pad_to=Kp)
    w_a = params["w1"].reshape(K, cout) * sc1[None, :]
    w_comb = jnp.zeros((Kp, 2 * cout), jnp.float32)
    w_comb = w_comb.at[:K, :cout].set(w_a)
    # 1x1 stride-s conv reads exactly the centre tap (dy=dx=1) of the window.
    w_comb = w_comb.at[4 * cin:5 * cin, cout:].set(params["w3"] * sc2[None, :])
    b_comb = jnp.concatenate([params["b1"] * sc1 + sh1,
                              params["b3"] * sc2 + sh2])
    y1s = stem_conv1(patches, w_comb.astype(jnp.bfloat16), b_comb, cout)
    y1s = y1s.reshape(B, Ho, Wo, 2 * cout)          # split fuses into the pads

    # --- stage 2: conv3x3 + bias + shortcut + SE (pool/MLP/scale) fused -----
    wp = ((Wo + 2 + 7) // 8) * 8                    # padded row width, 8-aligned
    l2 = Ho * wp
    y1p = jnp.pad(y1s[..., :cout],
                  ((0, 0), (1, 2), (1, wp - Wo - 1), (0, 0))
                  ).reshape(B, (Ho + 3) * wp, cout)
    sp = jnp.pad(y1s[..., cout:],
                 ((0, 0), (0, 0), (0, wp - Wo), (0, 0))).reshape(B, l2, cout)
    w2 = params["w2"].reshape(9, cout, cout).astype(jnp.bfloat16)
    b2 = params["b2"].reshape(1, cout)
    mask = ((jnp.arange(l2) % wp) < Wo).astype(jnp.float32).reshape(l2, 1)
    o = stem_conv2_se(y1p, sp, w2, b2, mask, params["se_w1"], params["se_w2"],
                      wp=wp, inv_hw=1.0 / (Ho * Wo))

    y = o.reshape(B, Ho, wp, cout)[:, :, :Wo, :]    # drop garbage columns
    return jnp.transpose(y, (0, 3, 1, 2))           # NHWC -> NCHW


# ----------------------------------------------------------------------------
# Pure-JAX reference (mirrors the kernel's bf16 rounding of matmul operands so
# the comparison isolates structural correctness of the Pallas pipeline).
# ----------------------------------------------------------------------------
def _conv_ref(x, w, stride, pad):
    return jax.lax.conv_general_dilated(
        x, w, window_strides=(stride, stride), padding=[(pad, pad), (pad, pad)],
        dimension_numbers=("NHWC", "HWIO", "NHWC"),
        precision=jax.lax.Precision.HIGHEST)


def stem_block_ref(x_nchw, p, stride):
    f32, bf16 = jnp.float32, jnp.bfloat16
    x = jnp.transpose(x_nchw, (0, 2, 3, 1)).astype(f32)
    sc1, sh1 = bn_fold(p["bn1_gamma"], p["bn1_beta"], p["bn1_mean"], p["bn1_var"])
    sc2, sh2 = bn_fold(p["bn2_gamma"], p["bn2_beta"], p["bn2_mean"], p["bn2_var"])
    xq = x.astype(bf16).astype(f32)
    w1q = (p["w1"] * sc1).astype(bf16).astype(f32)
    w3q = (p["w3"] * sc2).astype(bf16).astype(f32)
    y1 = jnp.maximum(_conv_ref(xq, w1q, stride, 1) + (p["b1"] * sc1 + sh1), 0.0)
    s = _conv_ref(xq, w3q.reshape(1, 1, *w3q.shape), stride, 0) + (p["b3"] * sc2 + sh2)
    y1q = y1.astype(bf16).astype(f32)
    w2q = p["w2"].astype(bf16).astype(f32)
    t = _conv_ref(y1q, w2q, 1, 1) + p["b2"] + s
    m = jnp.mean(t, axis=(1, 2))
    h = jnp.maximum(jnp.dot(m, p["se_w1"], precision=jax.lax.Precision.HIGHEST), 0.0)
    z = jax.nn.sigmoid(jnp.dot(h, p["se_w2"], precision=jax.lax.Precision.HIGHEST))
    y = t * z[:, None, None, :]
    return jnp.transpose(y, (0, 3, 1, 2))


# ----------------------------------------------------------------------------
if __name__ == "__main__":
    key = jax.random.PRNGKey(0)
    k_param, k_input = jax.random.split(key)

    batch, in_c, out_c, hw, stride = 2, 4, 32, 16, 2
    params = init_params(k_param, in_c, out_c)
    x = jax.random.normal(k_input, (batch, in_c, hw, hw), jnp.float32)

    out = jax.jit(stem_block, static_argnums=2)(x, params, stride)
    out = jax.block_until_ready(out)
    assert out.shape == (batch, out_c, hw // stride, hw // stride), out.shape
    assert jnp.all(jnp.isfinite(out))

    ref = stem_block_ref(x, params, stride)
    max_err = float(jnp.max(jnp.abs(out - ref)))
    assert max_err < 5e-3, f"max abs error vs reference: {max_err}"
    print("KERNEL_OK")
</pallas_src>

<mosaic_0001>
module attributes {stable_mosaic.version = 11 : i64} {
  func.func @_stem_conv1_kernel(%arg0: i32, %arg1: memref<64x48xbf16, #tpu.memory_space<vmem>>, %arg2: memref<48x64xbf16, #tpu.memory_space<vmem>>, %arg3: memref<1x64xf32, #tpu.memory_space<vmem>>, %arg4: memref<64x64xf32, #tpu.memory_space<vmem>>) attributes {dimension_semantics = [#tpu.dimension_semantics<parallel>], iteration_bounds = array<i64: 2>, scalar_prefetch = 0 : i64, scratch_operands = 0 : i64, tpu.core_type = #tpu.core_type<tc>, window_params = [{transform_indices = @transform_0, window_bounds = array<i64: 64, 48>}, {pipeline_mode = #tpu.pipeline_mode<synchronous>, transform_indices = @transform_1, window_bounds = array<i64: 48, 64>}, {pipeline_mode = #tpu.pipeline_mode<synchronous>, transform_indices = @transform_2, window_bounds = array<i64: 1, 64>}, {transform_indices = @transform_3, window_bounds = array<i64: 64, 64>}]} {
    %c0 = arith.constant 0 : index
    %c0_0 = arith.constant 0 : index
    %0 = vector.load %arg1[%c0, %c0_0] : memref<64x48xbf16, #tpu.memory_space<vmem>>, vector<64x48xbf16>
    %c0_1 = arith.constant 0 : index
    %c0_2 = arith.constant 0 : index
    %1 = vector.load %arg2[%c0_1, %c0_2] : memref<48x64xbf16, #tpu.memory_space<vmem>>, vector<48x64xbf16>
    %cst = arith.constant dense<0.000000e+00> : vector<64x64xf32>
    %2 = tpu.matmul %0, %1, %cst {dimension_numbers = #tpu.dot_dimension_numbers<[1], [0], [0], [1], [0, 0, 1, 1], [], []>} : vector<64x48xbf16>, vector<48x64xbf16>, vector<64x64xf32> -> vector<64x64xf32>
    %c0_3 = arith.constant 0 : index
    %c0_4 = arith.constant 0 : index
    %3 = vector.load %arg3[%c0_3, %c0_4] : memref<1x64xf32, #tpu.memory_space<vmem>>, vector<1x64xf32>
    %4 = vector.broadcast %3 : vector<1x64xf32> to vector<64x64xf32>
    %5 = arith.addf %2, %4 : vector<64x64xf32>
    %6 = tpu.iota {dimensions = array<i32: 1>} : vector<64x64xi32>
    %c32_i32 = arith.constant 32 : i32
    %7 = vector.broadcast %c32_i32 : i32 to vector<64x64xi32>
    %8 = arith.cmpi slt, %6, %7 : vector<64x64xi32>
    %cst_5 = arith.constant 0.000000e+00 : f32
    %9 = vector.broadcast %cst_5 : f32 to vector<64x64xf32>
    %10 = arith.maximumf %5, %9 : vector<64x64xf32>
    %11 = arith.select %8, %10, %5 : vector<64x64xi1>, vector<64x64xf32>
    %c0_6 = arith.constant 0 : index
    %c0_7 = arith.constant 0 : index
    %12 = vector.load %arg4[%c0_6, %c0_7] : memref<64x64xf32, #tpu.memory_space<vmem>>, vector<64x64xf32>
    tpu.vector_store %arg4[%c0_6, %c0_7], %11 {strides = array<i32>} : memref<64x64xf32, #tpu.memory_space<vmem>>, vector<64x64xf32>,
    return
  }
  func.func @transform_0(%arg0: i32) -> (i32, i32) {
    %c0_i32 = arith.constant 0 : i32
    %c0_i32_0 = arith.constant 0 : i32
    return %arg0, %c0_i32 : i32, i32
  }
  func.func @transform_1(%arg0: i32) -> (i32, i32) {
    %c0_i32 = arith.constant 0 : i32
    %c0_i32_0 = arith.constant 0 : i32
    %c0_i32_1 = arith.constant 0 : i32
    return %c0_i32, %c0_i32_0 : i32, i32
  }
  func.func @transform_2(%arg0: i32) -> (i32, i32) {
    %c0_i32 = arith.constant 0 : i32
    %c0_i32_0 = arith.constant 0 : i32
    %c0_i32_1 = arith.constant 0 : i32
    return %c0_i32, %c0_i32_0 : i32, i32
  }
  func.func @transform_3(%arg0: i32) -> (i32, i32) {
    %c0_i32 = arith.constant 0 : i32
    %c0_i32_0 = arith.constant 0 : i32
    return %arg0, %c0_i32 : i32, i32
  }
}

module attributes {stable_mosaic.version = 11 : i64} {
  func.func @_conv2_se_kernel(%arg0: i32, %arg1: memref<1x176x32xf32, #tpu.memory_space<vmem>>, %arg2: memref<1x128x32xf32, #tpu.memory_space<vmem>>, %arg3: memref<9x32x32xbf16, #tpu.memory_space<vmem>>, %arg4: memref<1x32xf32, #tpu.memory_space<vmem>>, %arg5: memref<128x1xf32, #tpu.memory_space<vmem>>, %arg6: memref<32x4xf32, #tpu.memory_space<vmem>>, %arg7: memref<4x32xf32, #tpu.memory_space<vmem>>, %arg8: memref<1x128x32xf32, #tpu.memory_space<vmem>>) attributes {dimension_semantics = [#tpu.dimension_semantics<parallel>], iteration_bounds = array<i64: 2>, scalar_prefetch = 0 : i64, scratch_operands = 0 : i64, tpu.core_type = #tpu.core_type<tc>, window_params = [{transform_indices = @transform_0, window_bounds = array<i64: 1, 176, 32>}, {transform_indices = @transform_1, window_bounds = array<i64: 1, 128, 32>}, {pipeline_mode = #tpu.pipeline_mode<synchronous>, transform_indices = @transform_2, window_bounds = array<i64: 9, 32, 32>}, {pipeline_mode = #tpu.pipeline_mode<synchronous>, transform_indices = @transform_3, window_bounds = array<i64: 1, 32>}, {pipeline_mode = #tpu.pipeline_mode<synchronous>, transform_indices = @transform_4, window_bounds = array<i64: 128, 1>}, {pipeline_mode = #tpu.pipeline_mode<synchronous>, transform_indices = @transform_5, window_bounds = array<i64: 32, 4>}, {pipeline_mode = #tpu.pipeline_mode<synchronous>, transform_indices = @transform_6, window_bounds = array<i64: 4, 32>}, {transform_indices = @transform_7, window_bounds = array<i64: 1, 128, 32>}]} {
    %c0 = arith.constant 0 : index
    %c0_0 = arith.constant 0 : index
    %c0_1 = arith.constant 0 : index
    %0 = vector.load %arg1[%c0, %c0_0, %c0_1] : memref<1x176x32xf32, #tpu.memory_space<vmem>>, vector<1x128x32xf32>
    %1 = vector.shape_cast %0 : vector<1x128x32xf32> to vector<128x32xf32>
    %2 = arith.truncf %1 : vector<128x32xf32> to vector<128x32xbf16>
    %c0_2 = arith.constant 0 : index
    %c0_3 = arith.constant 0 : index
    %c0_4 = arith.constant 0 : index
    %3 = vector.load %arg3[%c0_2, %c0_3, %c0_4] : memref<9x32x32xbf16, #tpu.memory_space<vmem>>, vector<1x32x32xbf16>
    %4 = vector.shape_cast %3 : vector<1x32x32xbf16> to vector<32x32xbf16>
    %cst = arith.constant dense<0.000000e+00> : vector<128x32xf32>
    %5 = tpu.matmul %2, %4, %cst {dimension_numbers = #tpu.dot_dimension_numbers<[1], [0], [0], [1], [0, 0, 1, 1], [], []>} : vector<128x32xbf16>, vector<32x32xbf16>, vector<128x32xf32> -> vector<128x32xf32>
    %c0_5 = arith.constant 0 : index
    %c1 = arith.constant 1 : index
    %c0_6 = arith.constant 0 : index
    %6 = vector.load %arg1[%c0_5, %c1, %c0_6] : memref<1x176x32xf32, #tpu.memory_space<vmem>>, vector<1x128x32xf32>
    %7 = vector.shape_cast %6 : vector<1x128x32xf32> to vector<128x32xf32>
    %8 = arith.truncf %7 : vector<128x32xf32> to vector<128x32xbf16>
    %c1_7 = arith.constant 1 : index
    %c0_8 = arith.constant 0 : index
    %c0_9 = arith.constant 0 : index
    %9 = vector.load %arg3[%c1_7, %c0_8, %c0_9] : memref<9x32x32xbf16, #tpu.memory_space<vmem>>, vector<1x32x32xbf16>
    %10 = vector.shape_cast %9 : vector<1x32x32xbf16> to vector<32x32xbf16>
    %cst_10 = arith.constant dense<0.000000e+00> : vector<128x32xf32>
    %11 = tpu.matmul %8, %10, %cst_10 {dimension_numbers = #tpu.dot_dimension_numbers<[1], [0], [0], [1], [0, 0, 1, 1], [], []>} : vector<128x32xbf16>, vector<32x32xbf16>, vector<128x32xf32> -> vector<128x32xf32>
    %12 = arith.addf %5, %11 : vector<128x32xf32>
    %c0_11 = arith.constant 0 : index
    %c2 = arith.constant 2 : index
    %c0_12 = arith.constant 0 : index
    %13 = vector.load %arg1[%c0_11, %c2, %c0_12] : memref<1x176x32xf32, #tpu.memory_space<vmem>>, vector<1x128x32xf32>
    %14 = vector.shape_cast %13 : vector<1x128x32xf32> to vector<128x32xf32>
    %15 = arith.truncf %14 : vector<128x32xf32> to vector<128x32xbf16>
    %c2_13 = arith.constant 2 : index
    %c0_14 = arith.constant 0 : index
    %c0_15 = arith.constant 0 : index
    %16 = vector.load %arg3[%c2_13, %c0_14, %c0_15] : memref<9x32x32xbf16, #tpu.memory_space<vmem>>, vector<1x32x32xbf16>
    %17 = vector.shape_cast %16 : vector<1x32x32xbf16> to vector<32x32xbf16>
    %cst_16 = arith.constant dense<0.000000e+00> : vector<128x32xf32>
    %18 = tpu.matmul %15, %17, %cst_16 {dimension_numbers = #tpu.dot_dimension_numbers<[1], [0], [0], [1], [0, 0, 1, 1], [], []>} : vector<128x32xbf16>, vector<32x32xbf16>, vector<128x32xf32> -> vector<128x32xf32>
    %19 = arith.addf %12, %18 : vector<128x32xf32>
    %c0_17 = arith.constant 0 : index
    %c16 = arith.constant 16 : index
    %c0_18 = arith.constant 0 : index
    %20 = vector.load %arg1[%c0_17, %c16, %c0_18] : memref<1x176x32xf32, #tpu.memory_space<vmem>>, vector<1x128x32xf32>
    %21 = vector.shape_cast %20 : vector<1x128x32xf32> to vector<128x32xf32>
    %22 = arith.truncf %21 : vector<128x32xf32> to vector<128x32xbf16>
    %c3 = arith.constant 3 : index
    %c0_19 = arith.constant 0 : index
    %c0_20 = arith.constant 0 : index
    %23 = vector.load %arg3[%c3, %c0_19, %c0_20] : memref<9x32x32xbf16, #tpu.memory_space<vmem>>, vector<1x32x32xbf16>
    %24 = vector.shape_cast %23 : vector<1x32x32xbf16> to vector<32x32xbf16>
    %cst_21 = arith.constant dense<0.000000e+00> : vector<128x32xf32>
    %25 = tpu.matmul %22, %24, %cst_21 {dimension_numbers = #tpu.dot_dimension_numbers<[1], [0], [0], [1], [0, 0, 1, 1], [], []>} : vector<128x32xbf16>, vector<32x32xbf16>, vector<128x32xf32> -> vector<128x32xf32>
    %26 = arith.addf %19, %25 : vector<128x32xf32>
    %c0_22 = arith.constant 0 : index
    %c17 = arith.constant 17 : index
    %c0_23 = arith.constant 0 : index
    %27 = vector.load %arg1[%c0_22, %c17, %c0_23] : memref<1x176x32xf32, #tpu.memory_space<vmem>>, vector<1x128x32xf32>
    %28 = vector.shape_cast %27 : vector<1x128x32xf32> to vector<128x32xf32>
    %29 = arith.truncf %28 : vector<128x32xf32> to vector<128x32xbf16>
    %c4 = arith.constant 4 : index
    %c0_24 = arith.constant 0 : index
    %c0_25 = arith.constant 0 : index
    %30 = vector.load %arg3[%c4, %c0_24, %c0_25] : memref<9x32x32xbf16, #tpu.memory_space<vmem>>, vector<1x32x32xbf16>
    %31 = vector.shape_cast %30 : vector<1x32x32xbf16> to vector<32x32xbf16>
    %cst_26 = arith.constant dense<0.000000e+00> : vector<128x32xf32>
    %32 = tpu.matmul %29, %31, %cst_26 {dimension_numbers = #tpu.dot_dimension_numbers<[1], [0], [0], [1], [0, 0, 1, 1], [], []>} : vector<128x32xbf16>, vector<32x32xbf16>, vector<128x32xf32> -> vector<128x32xf32>
    %33 = arith.addf %26, %32 : vector<128x32xf32>
    %c0_27 = arith.constant 0 : index
    %c18 = arith.constant 18 : index
    %c0_28 = arith.constant 0 : index
    %34 = vector.load %arg1[%c0_27, %c18, %c0_28] : memref<1x176x32xf32, #tpu.memory_space<vmem>>, vector<1x128x32xf32>
    %35 = vector.shape_cast %34 : vector<1x128x32xf32> to vector<128x32xf32>
    %36 = arith.truncf %35 : vector<128x32xf32> to vector<128x32xbf16>
    %c5 = arith.constant 5 : index
    %c0_29 = arith.constant 0 : index
    %c0_30 = arith.constant 0 : index
    %37 = vector.load %arg3[%c5, %c0_29, %c0_30] : memref<9x32x32xbf16, #tpu.memory_space<vmem>>, vector<1x32x32xbf16>
    %38 = vector.shape_cast %37 : vector<1x32x32xbf16> to vector<32x32xbf16>
    %cst_31 = arith.constant dense<0.000000e+00> : vector<128x32xf32>
    %39 = tpu.matmul %36, %38, %cst_31 {dimension_numbers = #tpu.dot_dimension_numbers<[1], [0], [0], [1], [0, 0, 1, 1], [], []>} : vector<128x32xbf16>, vector<32x32xbf16>, vector<128x32xf32> -> vector<128x32xf32>
    %40 = arith.addf %33, %39 : vector<128x32xf32>
    %c0_32 = arith.constant 0 : index
    %c32 = arith.constant 32 : index
    %c0_33 = arith.constant 0 : index
    %41 = vector.load %arg1[%c0_32, %c32, %c0_33] : memref<1x176x32xf32, #tpu.memory_space<vmem>>, vector<1x128x32xf32>
    %42 = vector.shape_cast %41 : vector<1x128x32xf32> to vector<128x32xf32>
    %43 = arith.truncf %42 : vector<128x32xf32> to vector<128x32xbf16>
    %c6 = arith.constant 6 : index
    %c0_34 = arith.constant 0 : index
    %c0_35 = arith.constant 0 : index
    %44 = vector.load %arg3[%c6, %c0_34, %c0_35] : memref<9x32x32xbf16, #tpu.memory_space<vmem>>, vector<1x32x32xbf16>
    %45 = vector.shape_cast %44 : vector<1x32x32xbf16> to vector<32x32xbf16>
    %cst_36 = arith.constant dense<0.000000e+00> : vector<128x32xf32>
    %46 = tpu.matmul %43, %45, %cst_36 {dimension_numbers = #tpu.dot_dimension_numbers<[1], [0], [0], [1], [0, 0, 1, 1], [], []>} : vector<128x32xbf16>, vector<32x32xbf16>, vector<128x32xf32> -> vector<128x32xf32>
    %47 = arith.addf %40, %46 : vector<128x32xf32>
    %c0_37 = arith.constant 0 : index
    %c33 = arith.constant 33 : index
    %c0_38 = arith.constant 0 : index
    %48 = vector.load %arg1[%c0_37, %c33, %c0_38] : memref<1x176x32xf32, #tpu.memory_space<vmem>>, vector<1x128x32xf32>
    %49 = vector.shape_cast %48 : vector<1x128x32xf32> to vector<128x32xf32>
    %50 = arith.truncf %49 : vector<128x32xf32> to vector<128x32xbf16>
    %c7 = arith.constant 7 : index
    %c0_39 = arith.constant 0 : index
    %c0_40 = arith.constant 0 : index
    %51 = vector.load %arg3[%c7, %c0_39, %c0_40] : memref<9x32x32xbf16, #tpu.memory_space<vmem>>, vector<1x32x32xbf16>
    %52 = vector.shape_cast %51 : vector<1x32x32xbf16> to vector<32x32xbf16>
    %cst_41 = arith.constant dense<0.000000e+00> : vector<128x32xf32>
    %53 = tpu.matmul %50, %52, %cst_41 {dimension_numbers = #tpu.dot_dimension_numbers<[1], [0], [0], [1], [0, 0, 1, 1], [], []>} : vector<128x32xbf16>, vector<32x32xbf16>, vector<128x32xf32> -> vector<128x32xf32>
    %54 = arith.addf %47, %53 : vector<128x32xf32>
    %c0_42 = arith.constant 0 : index
    %c34 = arith.constant 34 : index
    %c0_43 = arith.constant 0 : index
    %55 = vector.load %arg1[%c0_42, %c34, %c0_43] : memref<1x176x32xf32, #tpu.memory_space<vmem>>, vector<1x128x32xf32>
    %56 = vector.shape_cast %55 : vector<1x128x32xf32> to vector<128x32xf32>
    %57 = arith.truncf %56 : vector<128x32xf32> to vector<128x32xbf16>
    %c8 = arith.constant 8 : index
    %c0_44 = arith.constant 0 : index
    %c0_45 = arith.constant 0 : index
    %58 = vector.load %arg3[%c8, %c0_44, %c0_45] : memref<9x32x32xbf16, #tpu.memory_space<vmem>>, vector<1x32x32xbf16>
    %59 = vector.shape_cast %58 : vector<1x32x32xbf16> to vector<32x32xbf16>
    %cst_46 = arith.constant dense<0.000000e+00> : vector<128x32xf32>
    %60 = tpu.matmul %57, %59, %cst_46 {dimension_numbers = #tpu.dot_dimension_numbers<[1], [0], [0], [1], [0, 0, 1, 1], [], []>} : vector<128x32xbf16>, vector<32x32xbf16>, vector<128x32xf32> -> vector<128x32xf32>
    %61 = arith.addf %54, %60 : vector<128x32xf32>
    %c0_47 = arith.constant 0 : index
    %c0_48 = arith.constant 0 : index
    %62 = vector.load %arg4[%c0_47, %c0_48] : memref<1x32xf32, #tpu.memory_space<vmem>>, vector<1x32xf32>
    %63 = vector.broadcast %62 : vector<1x32xf32> to vector<128x32xf32>
    %64 = arith.addf %61, %63 : vector<128x32xf32>
    %c0_49 = arith.constant 0 : index
    %c0_50 = arith.constant 0 : index
    %c0_51 = arith.constant 0 : index
    %65 = vector.load %arg2[%c0_49, %c0_50, %c0_51] : memref<1x128x32xf32, #tpu.memory_space<vmem>>, vector<1x128x32xf32>
    %66 = vector.shape_cast %65 : vector<1x128x32xf32> to vector<128x32xf32>
    %67 = arith.addf %64, %66 : vector<128x32xf32>
    %c0_52 = arith.constant 0 : index
    %c0_53 = arith.constant 0 : index
    %68 = vector.load %arg5[%c0_52, %c0_53] : memref<128x1xf32, #tpu.memory_space<vmem>>, vector<128x1xf32>
    %69 = vector.broadcast %68 : vector<128x1xf32> to vector<128x32xf32>
    %70 = arith.mulf %67, %69 : vector<128x32xf32>
    %cst_54 = arith.constant dense<0.000000e+00> : vector<32xf32>
    %71 = vector.multi_reduction <add>, %70, %cst_54 [0] : vector<128x32xf32> to vector<32xf32>
    %72 = vector.shape_cast %71 : vector<32xf32> to vector<1x32xf32>
    %cst_55 = arith.constant 1.562500e-02 : f32
    %73 = vector.broadcast %cst_55 : f32 to vector<1x32xf32>
    %74 = arith.mulf %72, %73 : vector<1x32xf32>
    %c0_56 = arith.constant 0 : index
    %c0_57 = arith.constant 0 : index
    %75 = vector.load %arg6[%c0_56, %c0_57] : memref<32x4xf32, #tpu.memory_space<vmem>>, vector<32x4xf32>
    %cst_58 = arith.constant dense<0.000000e+00> : vector<1x4xf32>
    %76 = tpu.matmul %74, %75, %cst_58 {dimension_numbers = #tpu.dot_dimension_numbers<[1], [0], [0], [1], [0, 0, 1, 1], [], []>} : vector<1x32xf32>, vector<32x4xf32>, vector<1x4xf32> -> vector<1x4xf32>
    %cst_59 = arith.constant 0.000000e+00 : f32
    %77 = vector.broadcast %cst_59 : f32 to vector<1x4xf32>
    %78 = arith.maximumf %76, %77 : vector<1x4xf32>
    %c0_60 = arith.constant 0 : index
    %c0_61 = arith.constant 0 : index
    %79 = vector.load %arg7[%c0_60, %c0_61] : memref<4x32xf32, #tpu.memory_space<vmem>>, vector<4x32xf32>
    %cst_62 = arith.constant dense<0.000000e+00> : vector<1x32xf32>
    %80 = tpu.matmul %78, %79, %cst_62 {dimension_numbers = #tpu.dot_dimension_numbers<[1], [0], [0], [1], [0, 0, 1, 1], [], []>} : vector<1x4xf32>, vector<4x32xf32>, vector<1x32xf32> -> vector<1x32xf32>
    %81 = arith.negf %80 : vector<1x32xf32>
    %82 = math.exp %81 : vector<1x32xf32>
    %cst_63 = arith.constant 1.000000e+00 : f32
    %83 = vector.broadcast %cst_63 : f32 to vector<1x32xf32>
    %84 = arith.addf %83, %82 : vector<1x32xf32>
    %85 = arith.divf %83, %84 : vector<1x32xf32>
    %86 = vector.broadcast %85 : vector<1x32xf32> to vector<128x32xf32>
    %87 = arith.mulf %67, %86 : vector<128x32xf32>
    %c0_64 = arith.constant 0 : index
    %c0_65 = arith.constant 0 : index
    %c0_66 = arith.constant 0 : index
    %88 = vector.load %arg8[%c0_64, %c0_65, %c0_66] : memref<1x128x32xf32, #tpu.memory_space<vmem>>, vector<1x128x32xf32>
    %89 = vector.shape_cast %88 : vector<1x128x32xf32> to vector<128x32xf32>
    %90 = vector.shape_cast %87 : vector<128x32xf32> to vector<1x128x32xf32>
    tpu.vector_store %arg8[%c0_64, %c0_65, %c0_66], %90 {strides = array<i32>} : memref<1x128x32xf32, #tpu.memory_space<vmem>>, vector<1x128x32xf32>,
    return
  }
  func.func @transform_0(%arg0: i32) -> (i32, i32, i32) {
    %c0_i32 = arith.constant 0 : i32
    %c0_i32_0 = arith.constant 0 : i32
    %c0_i32_1 = arith.constant 0 : i32
    return %arg0, %c0_i32, %c0_i32_0 : i32, i32, i32
  }
  func.func @transform_1(%arg0: i32) -> (i32, i32, i32) {
    %c0_i32 = arith.constant 0 : i32
    %c0_i32_0 = arith.constant 0 : i32
    %c0_i32_1 = arith.constant 0 : i32
    return %arg0, %c0_i32, %c0_i32_0 : i32, i32, i32
  }
  func.func @transform_2(%arg0: i32) -> (i32, i32, i32) {
    %c0_i32 = arith.constant 0 : i32
    %c0_i32_0 = arith.constant 0 : i32
    %c0_i32_1 = arith.constant 0 : i32
    %c0_i32_2 = arith.constant 0 : i32
    return %c0_i32, %c0_i32_0, %c0_i32_1 : i32, i32, i32
  }
  func.func @transform_3(%arg0: i32) -> (i32, i32) {
    %c0_i32 = arith.constant 0 : i32
    %c0_i32_0 = arith.constant 0 : i32
    %c0_i32_1 = arith.constant 0 : i32
    return %c0_i32, %c0_i32_0 : i32, i32
  }
  func.func @transform_4(%arg0: i32) -> (i32, i32) {
    %c0_i32 = arith.constant 0 : i32
    %c0_i32_0 = arith.constant 0 : i32
    %c0_i32_1 = arith.constant 0 : i32
    return %c0_i32, %c0_i32_0 : i32, i32
  }
  func.func @transform_5(%arg0: i32) -> (i32, i32) {
    %c0_i32 = arith.constant 0 : i32
    %c0_i32_0 = arith.constant 0 : i32
    %c0_i32_1 = arith.constant 0 : i32
    return %c0_i32, %c0_i32_0 : i32, i32
  }
  func.func @transform_6(%arg0: i32) -> (i32, i32) {
    %c0_i32 = arith.constant 0 : i32
    %c0_i32_0 = arith.constant 0 : i32
    %c0_i32_1 = arith.constant 0 : i32
    return %c0_i32, %c0_i32_0 : i32, i32
  }
  func.func @transform_7(%arg0: i32) -> (i32, i32, i32) {
    %c0_i32 = arith.constant 0 : i32
    %c0_i32_0 = arith.constant 0 : i32
    %c0_i32_1 = arith.constant 0 : i32
    return %arg0, %c0_i32, %c0_i32_0 : i32, i32, i32
  }
}

</mosaic_0001>

<bundles_post_ra>
// kernel: stem_block.2
= control target key start
LH: loop header
LB: loop body
LE: loop exit
PB: predicated region body
PF: predicated region fallthrough
CT: control target
= control target key end

     0   :  { %s453_s12 = smov 0   ;;  %s512_s0 = inlined_call_operand.vmem [shape: bf16[128,48], index: 0, kind: input, shape index: {}]   ;;  %s513_s1 = inlined_call_operand.vmem [shape: bf16[48,64], index: 1, kind: input, shape index: {}]   ;;  %s514_s2 = inlined_call_operand.vmem [shape: f32[1,64], index: 2, kind: input, shape index: {}]   ;;  %s515_s3 = inlined_call_operand.vmem [shape: f32[128,64], index: 3, kind: output, shape index: {}]  }
   0x1 LB: > { %s357_s13 = sadd.s32 4294967295, %s431_s12   ;;  %p361_p0 = scmp.ge.s32.totalorder %s431_s12, 1  ;;  %s431_s12 = sphi %s453_s12, %s13_s12  }
   0x2   : > { %p138_p1 = scmp.lt.s32.totalorder %s431_s12, 3 }
   0x4   : > { %p139_p2 = pnand %p361_p0, %p138_p1 }
   0x5   : > { %s362_s16 = sshll.u32 (!%p139_p2), %s357_s13, 3 }
   0x6   : > { %142 = sbr.rel (%p139_p2) target bundleno = 171 (0xab), region = 32  ;;  %p163_p3 = scmp.lt.s32.totalorder (!%p139_p2), %s362_s16, 15 }
   0xb   : > { %v406_v0 = vld [vmem:[%s513_s1 + $0x10] sm:$0xff]  ;;  %v405_v1 = vld [vmem:[%s513_s1 + $0x8] sm:$0xff]  ;;  %s517_s16 = smov (!%p163_p3, %s362_s16), 15  ;;  %v404_v2 = vld [vmem:[%s513_s1] sm:$0xff]  ;;  %vm231_vm0 = vcmask 392192   ;;  %v273_v7 = vlaneseq  ;;  %vm292_vm2 = vcmask 523264  }
   0xc   : > { %249 = vmatpush.bf16.msra.mxu0 %v406_v0  ;;  %407 = vmatpush.bf16.msra.mxu1 %v406_v0  ;;  %s363_s19 = sshll.u32 %s517_s16, 2  ;;  %v424_v8 = vld [vmem:[%s514_s2] ss:$0 sm:$0xff]  ;;  %s365_s27 = sshll.u32 %s517_s16, 3 }
   0xd   : > { %408 = vmatpush.bf16.msra.mxu2 %v406_v0  ;;  %409 = vmatpush.bf16.msra.mxu3 %v406_v0  ;;  %s166_s24 = scalar_lea.vmem %s512_s0, %s363_s19  ;;  %v274_v9 = vand.u32 127, %v273_v7  ;;  %s483_s30 = scalar_lea.vmem %s515_s3, %s365_s27 }
   0xe   : > { %v400_v3 = vld [vmem:[%s166_s24] sm:$0xff]  ;;  %v401_v4 = vld [vmem:[%s166_s24 + $0x8] sm:$0xff]  ;;  %v402_v5 = vld [vmem:[%s166_s24 + $0x10] sm:$0xff] }
   0xf   : > { %v403_v6 = vld [vmem:[%s166_s24 + $0x18] sm:$0xff]  ;;  %vm275_vm1 = vcmp.lt.s32.totalorder %v274_v9, 32 }
  0x10   : > { %250 = vmatpush.bf16.msra.mxu0 %v405_v1  ;;  %410 = vmatpush.bf16.msra.mxu1 %v405_v1 }
  0x11   : > { %411 = vmatpush.bf16.msra.mxu2 %v405_v1  ;;  %412 = vmatpush.bf16.msra.mxu3 %v405_v1 }
  0x14   : > { %251 = vmatpush.bf16.msra.mxu0 %v404_v2  ;;  %413 = vmatpush.bf16.msra.mxu1 %v404_v2 }
  0x15   : > { %414 = vmatpush.bf16.msra.mxu2 %v404_v2  ;;  %415 = vmatpush.bf16.msra.mxu3 %v404_v2 }
  0x17   : > { %394 = vmatmul.msk.bf16.vlgmr.msra.gmra.mxu0 %vm231_vm0, %v400_v3  ;;  %395 = vmatmul.msk.bf16.vlgmr.msra.gmra.mxu1 %vm231_vm0, %v401_v4 }
  0x18   : > { %396 = vmatmul.msk.bf16.vlgmr.msra.gmra.mxu2 %vm231_vm0, %v402_v5  ;;  %397 = vmatmul.msk.bf16.vlgmr.msra.gmra.mxu3 %vm231_vm0, %v403_v6 }
  0x94   : > { %v253_v10 = vpop.f32.mrf.mxu0  ;;  %v258_v11 = vpop.f32.mrf.mxu1 }
  0x95   : > { %v254_v12 = vadd.f32 %v424_v8, %v253_v10  ;;  %v259_v13 = vadd.f32 %v424_v8, %v258_v11 }
  0x97   : > { %v276_v14 = vmax.f32 %v254_v12, 0.0  ;;  %v278_v15 = vmax.f32 %v259_v13, 0.0 }
  0x99   : > { %v284_v16 = vsel %vm275_vm1, %v276_v14, %v254_v12  ;;  %v286_v17 = vsel %vm275_vm1, %v278_v15, %v259_v13 }
  0x9a   : > { %293 = vst.msk [vmem:[%s483_s30] sm:$0xff] %vm292_vm2, %v284_v16 }
  0x9b   : > { %295 = vst.msk [vmem:[%s483_s30 + $0x10] sm:$0xff] %vm292_vm2, %v286_v17  ;;  %v263_v18 = vpop.f32.mrf.mxu2  ;;  %v268_v19 = vpop.f32.mrf.mxu3 }
  0x9c   : > { %v264_v20 = vadd.f32 %v424_v8, %v263_v18  ;;  %v269_v21 = vadd.f32 %v424_v8, %v268_v19  ;;  %v255_v22 = vpop.f32.mrf.mxu0  ;;  %v260_v23 = vpop.f32.mrf.mxu1 }
  0x9d   : > { %v256_v24 = vadd.f32 %v424_v8, %v255_v22  ;;  %v261_v25 = vadd.f32 %v424_v8, %v260_v23 }
  0x9e   : > { %v280_v26 = vmax.f32 %v264_v20, 0.0  ;;  %v282_v27 = vmax.f32 %v269_v21, 0.0 }
  0x9f   : > { %v277_v28 = vmax.f32 %v256_v24, 0.0  ;;  %v279_v29 = vmax.f32 %v261_v25, 0.0 }
  0xa0   : > { %v288_v30 = vsel %vm275_vm1, %v280_v26, %v264_v20  ;;  %v290_v31 = vsel %vm275_vm1, %v282_v27, %v269_v21 }
  0xa1   : > { %297 = vst.msk [vmem:[%s483_s30 + $0x20] sm:$0xff] %vm292_vm2, %v288_v30  ;;  %v285_v32 = vsel %vm275_vm1, %v277_v28, %v256_v24  ;;  %v287_v33 = vsel %vm275_vm1, %v279_v29, %v261_v25 }
  0xa2   : > { %299 = vst.msk [vmem:[%s483_s30 + $0x30] sm:$0xff] %vm292_vm2, %v290_v31 }
  0xa3   : > { %294 = vst.msk [vmem:[%s483_s30 + $0x8] sm:$0xff] %vm292_vm2, %v285_v32  ;;  %v265_v34 = vpop.f32.mrf.mxu2  ;;  %v270_v35 = vpop.f32.mrf.mxu3 }
  0xa4   : > { %296 = vst.msk [vmem:[%s483_s30 + $0x18] sm:$0xff] %vm292_vm2, %v287_v33  ;;  %v266_v36 = vadd.f32 %v424_v8, %v265_v34  ;;  %v271_v37 = vadd.f32 %v424_v8, %v270_v35 }
  0xa6   : > { %v281_v38 = vmax.f32 %v266_v36, 0.0  ;;  %v283_v39 = vmax.f32 %v271_v37, 0.0 }
  0xa8   : > { %v289_v40 = vsel %vm275_vm1, %v281_v38, %v266_v36  ;;  %v291_v41 = vsel %vm275_vm1, %v283_v39, %v271_v37 }
  0xa9   : > { %298 = vst.msk [vmem:[%s483_s30 + $0x28] sm:$0xff] %vm292_vm2, %v289_v40 }
  0xaa   : > { %300 = vst.msk [vmem:[%s483_s30 + $0x38] sm:$0xff] %vm292_vm2, %v291_v41 }
  0xab PF: > { %s13_s12 = sadd.s32 1, %s431_s12  }
  0xac   : > { %p10_p4 = scmp.ge.s32.totalorder %s13_s12, 4  }
  0xae   :  { %12 = sbr.rel (!%p10_p4) target bundleno = 1 (0x1), region = 62 }

// kernel: stem_block.3
= control target key start
LH: loop header
LB: loop body
LE: loop exit
PB: predicated region body
PF: predicated region fallthrough
CT: control target
= control target key end

     0   :  { %s2101_s24 = smov 0   ;;  %s2768_s0 = inlined_call_operand.vmem [shape: f32[2,176,32], index: 0, kind: input, shape index: {}]   ;;  %s2769_s1 = inlined_call_operand.vmem [shape: f32[2,128,32], index: 1, kind: input, shape index: {}]   ;;  %s2770_s2 = inlined_call_operand.vmem [shape: bf16[9,32,32], index: 2, kind: input, shape index: {}]   ;;  %s2771_s3 = inlined_call_operand.vmem [shape: f32[1,32], index: 3, kind: input, shape index: {}]   ;;  %s2772_s4 = inlined_call_operand.vmem [shape: f32[128,1], index: 4, kind: input, shape index: {}]   ;;  %s2773_s5 = inlined_call_operand.vmem [shape: f32[32,4], index: 5, kind: input, shape index: {}]   ;;  %s2774_s6 = inlined_call_operand.vmem [shape: f32[4,32], index: 6, kind: input, shape index: {}]   ;;  %s2775_s7 = inlined_call_operand.vmem [shape: f32[2,128,32], index: 7, kind: output, shape index: {}]  }
   0x1 LB: > { %s1816_s25 = sadd.s32 4294967295, %s2058_s24   ;;  %p1820_p0 = scmp.ge.s32.totalorder %s2058_s24, 1  ;;  %s2058_s24 = sphi %s2101_s24, %s17_s24  }
   0x2   : > { %p247_p1 = scmp.lt.s32.totalorder %s2058_s24, 3 }
   0x4   : > { %p248_p2 = pnand %p1820_p0, %p247_p1 }
   0x5   : > { %p284_p3 = scmp.lt.s32.totalorder (!%p248_p2), %s1816_s25, 1 }
   0x6   : > { %251 = sbr.rel (%p248_p2) target bundleno = 785 (0x311), region = 48 }
   0xb   : > { %v2013_v0 = vld [vmem:[%s2770_s2 + $0x18] sm:$0xff]  ;;  %v2012_v1 = vld [vmem:[%s2770_s2 + $0x10] sm:$0xff]  ;;  %s2777_s25 = smov (!%p284_p3, %s1816_s25), 1  ;;  %v2015_v2 = vld [vmem:[%s2770_s2 + $0x28] sm:$0xff]  ;;  %vm369_vm0 = vcmask 261120   ;;  %vm1673_vm1 = vcmask 1043456  }
   0xc   : > { %2028 = vmatpush.bf16.msra.mxu1 %v2013_v0  ;;  %2029 = vmatpush.bf16.msra.mxu2 %v2013_v0  ;;  %s2034_s9 = smul.u32 176, %s2777_s25  ;;  %v2017_v3 = vld [vmem:[%s2770_s2 + $0x38] sm:$0xff]  ;;  %v2011_v4 = vld [vmem:[%s2770_s2 + $0x8] sm:$0xff]  ;;  %v2016_v5 = vld [vmem:[%s2770_s2 + $0x30] sm:$0xff]  ;;  %s2008_s20 = sshll.u32 %s2777_s25, 7  ;;  %vm1669_vm2 = vcmask 31744  }
   0xd   : > { %2030 = vmatpush.bf16.msra.mxu3 %v2013_v0  ;;  %400 = vmatpush.bf16.msra.mxu0 %v2013_v0  ;;  %v2010_v6 = vld [vmem:[%s2770_s2] sm:$0xff]  ;;  %v2019_v20 = vld [vmem:[%s2770_s2 + $0x48] sm:$0xff]  ;;  %v2025_v32 = vld [vmem:[%s2770_s2 + $0x78] sm:$0xff]  ;;  %s2583_s27 = scalar_lea.vmem %s2769_s1, %s2008_s20  ;;  %s2715_s11 = scalar_lea.vmem %s2775_s7, %s2008_s20 }
   0xe   : > { %s2130_s16 = scalar_lea.vmem %s2768_s0, %s2034_s9  ;;  %v2014_v16 = vld [vmem:[%s2770_s2 + $0x20] sm:$0xff]  ;;  %v2023_v21 = vld [vmem:[%s2770_s2 + $0x68] sm:$0xff]  ;;  %v2021_v33 = vld [vmem:[%s2770_s2 + $0x58] sm:$0xff] }
   0xf   : > { %v330_v7 = vld [vmem:[%s2130_s16 + $0x11] sm:$0xff]  ;;  %v331_v8 = vld [vmem:[%s2130_s16 + $0x19] sm:$0xff]  ;;  %v328_v17 = vld [vmem:[%s2130_s16 + $0x1] sm:$0xff] }
  0x10   : > { %2031 = vmatpush.bf16.msra.mxu1 %v2012_v1  ;;  %2032 = vmatpush.bf16.msra.mxu2 %v2012_v1  ;;  %v334_v9 = vld [vmem:[%s2130_s16 + $0x31] sm:$0xff]  ;;  %v345_v10 = vpack.c.bf16 %v331_v8, %v330_v7  ;;  %v335_v11 = vld [vmem:[%s2130_s16 + $0x39] sm:$0xff]  ;;  %v329_v18 = vld [vmem:[%s2130_s16 + $0x9] sm:$0xff] }
  0x11   : > { %2033 = vmatpush.bf16.msra.mxu3 %v2012_v1  ;;  %v338_v12 = vld [vmem:[%s2130_s16 + $0x51] sm:$0xff]  ;;  %v339_v13 = vld [vmem:[%s2130_s16 + $0x59] sm:$0xff]  ;;  %v2144_v14 = vpack.c.bf16 %v335_v11, %v334_v9  ;;  %401 = vmatpush.bf16.msra.mxu0 %v2012_v1  ;;  %v344_v19 = vpack.c.bf16 %v329_v18, %v328_v17  ;;  %v332_v23 = vld [vmem:[%s2130_s16 + $0x21] sm:$0xff] }
  0x12   : > { %v2146_v15 = vpack.c.bf16 %v339_v13, %v338_v12  ;;  %v2018_v22 = vld [vmem:[%s2770_s2 + $0x40] sm:$0xff]  ;;  %v333_v24 = vld [vmem:[%s2130_s16 + $0x29] sm:$0xff]  ;;  %v342_v35 = vld [vmem:[%s2130_s16 + $0x71] sm:$0xff] }
  0x13   : > { %1839 = vmatmul.msk.bf16.vlgmr.msra.gmra.mxu1 %vm369_vm0, %v345_v10  ;;  %1841 = vmatmul.msk.bf16.vlgmr.msra.gmra.mxu2 %vm369_vm0, %v2144_v14  ;;  %v336_v25 = vld [vmem:[%s2130_s16 + $0x41] sm:$0xff]  ;;  %v337_v26 = vld [vmem:[%s2130_s16 + $0x49] sm:$0xff]  ;;  %v2174_v29 = vpack.c.bf16 %v333_v24, %v332_v23  ;;  %v343_v38 = vld [vmem:[%s2130_s16 + $0x79] sm:$0xff] }
  0x14   : > { %599 = vmatpush.bf16.msrb.mxu2 %v2015_v2  ;;  %485 = vmatpush.bf16.msrb.mxu1 %v2011_v4  ;;  %v340_v27 = vld [vmem:[%s2130_s16 + $0x61] sm:$0xff]  ;;  %v341_v28 = vld [vmem:[%s2130_s16 + $0x69] sm:$0xff]  ;;  %v2176_v30 = vpack.c.bf16 %v337_v26, %v336_v25  ;;  %v2202_v42 = vpack.c.bf16 %v343_v38, %v342_v35  ;;  %v303_v45 = vld [vmem:[%s2130_s16 + $0x18] sm:$0xff] }
  0x15   : > { %729 = vmatpush.bf16.msrb.mxu3 %v2017_v3  ;;  %1838 = vmatmul.msk.bf16.vlgmr.msra.gmra.mxu0 %vm369_vm0, %v344_v19  ;;  %v2178_v31 = vpack.c.bf16 %v341_v28, %v340_v27  ;;  %v2027_v34 = vld [vmem:[%s2770_s2 + $0x88] sm:$0xff]  ;;  %v300_v36 = vld [vmem:[%s2130_s16] sm:$0xff]  ;;  %v302_v44 = vld [vmem:[%s2130_s16 + $0x10] sm:$0xff] }
  0x16   : > { %1843 = vmatmul.msk.bf16.vlgmr.msra.gmra.mxu3 %vm369_vm0, %v2146_v15  ;;  %859 = vmatpush.bf16.msrb.mxu0 %v2019_v20  ;;  %v301_v37 = vld [vmem:[%s2130_s16 + $0x8] sm:$0xff]  ;;  %v530_v46 = vld [vmem:[%s2130_s16 + $0x12] sm:$0xff]  ;;  %v531_v47 = vld [vmem:[%s2130_s16 + $0x1a] sm:$0xff]  ;;  %v317_v48 = vpack.c.bf16 %v303_v45, %v302_v44 }
  0x17   : > { %v528_v39 = vld [vmem:[%s2130_s16 + $0x2] sm:$0xff]  ;;  %v529_v40 = vld [vmem:[%s2130_s16 + $0xa] sm:$0xff]  ;;  %v316_v41 = vpack.c.bf16 %v301_v37, %v300_v36  ;;  %v2214_v49 = vpack.c.bf16 %v531_v47, %v530_v46  ;;  %v307_v58 = vld [vmem:[%s2130_s16 + $0x38] sm:$0xff] }
  0x18   : > { %486 = vmatpush.bf16.msrb.mxu1 %v2010_v6  ;;  %600 = vmatpush.bf16.msrb.mxu2 %v2014_v16  ;;  %v544_v43 = vpack.c.bf16 %v529_v40, %v528_v39  ;;  %v304_v50 = vld [vmem:[%s2130_s16 + $0x20] sm:$0xff]  ;;  %v305_v51 = vld [vmem:[%s2130_s16 + $0x28] sm:$0xff]  ;;  %v306_v57 = vld [vmem:[%s2130_s16 + $0x30] sm:$0xff] }
  0x19   : > { %730 = vmatpush.bf16.msrb.mxu3 %v2016_v5  ;;  %v532_v52 = vld [vmem:[%s2130_s16 + $0x22] sm:$0xff]  ;;  %v533_v53 = vld [vmem:[%s2130_s16 + $0x2a] sm:$0xff]  ;;  %v2226_v54 = vpack.c.bf16 %v305_v51, %v304_v50  ;;  %v534_v59 = vld [vmem:[%s2130_s16 + $0x32] sm:$0xff]  ;;  %v2245_v61 = vpack.c.bf16 %v307_v58, %v306_v57 }
  0x1a   : > { %860 = vmatpush.bf16.msrb.mxu0 %v2018_v22  ;;  %v2228_v55 = vpack.c.bf16 %v533_v53, %v532_v52  ;;  %v2022_v56 = vld [vmem:[%s2770_s2 + $0x60] sm:$0xff]  ;;  %v2024_v63 = vld [vmem:[%s2770_s2 + $0x70] sm:$0xff]  ;;  %v309_v3 = vld [vmem:[%s2130_s16 + $0x48] sm:$0xff] }
  0x1b   : > { %v535_v60 = vld [vmem:[%s2130_s16 + $0x3a] sm:$0xff]  ;;  %v2020_v0 = vld [vmem:[%s2770_s2 + $0x50] sm:$0xff]  ;;  %v536_v4 = vld [vmem:[%s2130_s16 + $0x42] sm:$0xff] }
  0x1c   : > { %1119 = vmatpush.bf16.msra.mxu2 %v2023_v21  ;;  %989 = vmatpush.bf16.msra.mxu1 %v2021_v33  ;;  %v2247_v62 = vpack.c.bf16 %v535_v60, %v534_v59  ;;  %v2026_v1 = vld [vmem:[%s2770_s2 + $0x80] sm:$0xff]  ;;  %v537_v5 = vld [vmem:[%s2130_s16 + $0x4a] sm:$0xff]  ;;  %v311_v9 = vld [vmem:[%s2130_s16 + $0x58] sm:$0xff] }
  0x1d   : > { %1249 = vmatpush.bf16.msra.mxu3 %v2025_v32  ;;  %v308_v2 = vld [vmem:[%s2130_s16 + $0x40] sm:$0xff]  ;;  %v2272_v7 = vpack.c.bf16 %v537_v5, %v536_v4  ;;  %v310_v8 = vld [vmem:[%s2130_s16 + $0x50] sm:$0xff]  ;;  %v313_v17 = vld [vmem:[%s2130_s16 + $0x68] sm:$0xff] }
  0x1e   : > { %1379 = vmatpush.bf16.msra.mxu0 %v2027_v34  ;;  %v2270_v6 = vpack.c.bf16 %v309_v3, %v308_v2  ;;  %v539_v11 = vld [vmem:[%s2130_s16 + $0x5a] sm:$0xff]  ;;  %v2286_v12 = vpack.c.bf16 %v311_v9, %v310_v8  ;;  %v540_v18 = vld [vmem:[%s2130_s16 + $0x62] sm:$0xff]  ;;  %v541_v19 = vld [vmem:[%s2130_s16 + $0x6a] sm:$0xff]  ;;  %v2060_v3 = vmov 0  }
  0x1f   : > { %v312_v16 = vld [vmem:[%s2130_s16 + $0x60] sm:$0xff]  ;;  %v2304_v22 = vpack.c.bf16 %v541_v19, %v540_v18  ;;  %v803_v24 = vld [vmem:[%s2130_s16 + $0x89] sm:$0xff]  ;;  %v315_v34 = vld [vmem:[%s2130_s16 + $0x78] sm:$0xff]  ;;  %2044 = vset.pattern.permute.xlu0 %v2060_v3  ;;  %2045 = vset.pattern.permute.xlu1 %v2060_v3 }
  0x20   : > { %1120 = vmatpush.bf16.msra.mxu2 %v2022_v56  ;;  %990 = vmatpush.bf16.msra.mxu1 %v2020_v0  ;;  %v2302_v20 = vpack.c.bf16 %v313_v17, %v312_v16  ;;  %v802_v23 = vld [vmem:[%s2130_s16 + $0x81] sm:$0xff]  ;;  %v314_v33 = vld [vmem:[%s2130_s16 + $0x70] sm:$0xff] }
  0x21   : > { %1250 = vmatpush.bf16.msra.mxu3 %v2024_v63  ;;  %v2310_v25 = vpack.c.bf16 %v803_v24, %v802_v23  ;;  %v542_v36 = vld [vmem:[%s2130_s16 + $0x72] sm:$0xff]  ;;  %v543_v37 = vld [vmem:[%s2130_s16 + $0x7a] sm:$0xff]  ;;  %v2330_v40 = vpack.c.bf16 %v315_v34, %v314_v33  ;;  %v673_v51 = vld [vmem:[%s2130_s16 + $0x88] sm:$0xff]  ;;  %2046 = vset.pattern.permute.xlu2 %v2060_v3 }
  0x22   : > { %1380 = vmatpush.bf16.msra.mxu0 %v2026_v1  ;;  %v672_v50 = vld [vmem:[%s2130_s16 + $0x80] sm:$0xff]  ;;  %v1491_v16 = vld [vmem:[%s2772_s4 + $0x8] sm:$0xff] }
  0x23   : > { %1840 = vmatmul.msk.bf16.gmra.mxu1 %vm369_vm0, %v2174_v29  ;;  %1842 = vmatmul.msk.bf16.gmra.mxu2 %vm369_vm0, %v2176_v30  ;;  %v2354_v57 = vpack.c.bf16 %v673_v51, %v672_v50 }
  0x25   : > { %1914 = vmatmul.msk.bf16.vlgmr.msrb.gmra.mxu0 %vm369_vm0, %v345_v10  ;;  %v538_v10 = vld [vmem:[%s2130_s16 + $0x52] sm:$0xff] }
  0x26   : > { %1844 = vmatmul.msk.bf16.gmra.mxu3 %vm369_vm0, %v2178_v31  ;;  %v2288_v13 = vpack.c.bf16 %v539_v11, %v538_v10 }
  0x33   : > { %1854 = vmatmul.msk.bf16.vlgmr.msrb.gmra.mxu1 %vm369_vm0, %v316_v41  ;;  %1874 = vmatmul.msk.bf16.vlgmr.msrb.gmra.mxu2 %vm369_vm0, %v544_v43  ;;  %v2332_v43 = vpack.c.bf16 %v543_v37, %v542_v36 }
  0x35   : > { %1915 = vmatmul.msk.bf16.gmra.mxu0 %vm369_vm0, %v2174_v29 }
  0x36   : > { %1845 = vmatmul.msk.bf16.gmra.mxu3 %vm369_vm0, %v2202_v42 }
  0x43   : > { %1855 = vmatmul.msk.bf16.gmra.mxu1 %vm369_vm0, %v317_v48  ;;  %1875 = vmatmul.msk.bf16.gmra.mxu2 %vm369_vm0, %v2214_v49 }
  0x45   : > { %1916 = vmatmul.msk.bf16.gmra.mxu0 %vm369_vm0, %v2144_v14 }
  0x46   : > { %1894 = vmatmul.msk.bf16.vlgmr.msrb.gmra.mxu3 %vm369_vm0, %v317_v48 }
  0x53   : > { %1856 = vmatmul.msk.bf16.gmra.mxu1 %vm369_vm0, %v2226_v54  ;;  %1876 = vmatmul.msk.bf16.gmra.mxu2 %vm369_vm0, %v2228_v55 }
  0x55   : > { %1917 = vmatmul.msk.bf16.gmra.mxu0 %vm369_vm0, %v2176_v30 }
  0x56   : > { %1895 = vmatmul.msk.bf16.gmra.mxu3 %vm369_vm0, %v2226_v54 }
  0x63   : > { %1857 = vmatmul.msk.bf16.gmra.mxu1 %vm369_vm0, %v2245_v61  ;;  %1877 = vmatmul.msk.bf16.gmra.mxu2 %vm369_vm0, %v2247_v62 }
  0x65   : > { %1918 = vmatmul.msk.bf16.gmra.mxu0 %vm369_vm0, %v2146_v15 }
  0x66   : > { %1896 = vmatmul.msk.bf16.gmra.mxu3 %vm369_vm0, %v2245_v61 }
  0x73   : > { %1858 = vmatmul.msk.bf16.gmra.mxu1 %vm369_vm0, %v2270_v6  ;;  %1878 = vmatmul.msk.bf16.gmra.mxu2 %vm369_vm0, %v2272_v7 }
  0x75   : > { %1919 = vmatmul.msk.bf16.gmra.mxu0 %vm369_vm0, %v2178_v31 }
  0x76   : > { %1897 = vmatmul.msk.bf16.gmra.mxu3 %vm369_vm0, %v2270_v6 }
  0x83   : > { %1859 = vmatmul.msk.bf16.gmra.mxu1 %vm369_vm0, %v2286_v12  ;;  %1879 = vmatmul.msk.bf16.gmra.mxu2 %vm369_vm0, %v2288_v13 }
  0x85   : > { %1920 = vmatmul.msk.bf16.gmra.mxu0 %vm369_vm0, %v2202_v42 }
  0x86   : > { %1898 = vmatmul.msk.bf16.gmra.mxu3 %vm369_vm0, %v2286_v12 }
  0x90   : > { %v408_v21 = vpop.f32.mrf.mxu1 }
  0x92   : > { %v403_v26 = vpop.f32.mrf.mxu0 }
  0x93   : > { %1860 = vmatmul.msk.bf16.gmra.mxu1 %vm369_vm0, %v2302_v20  ;;  %1880 = vmatmul.msk.bf16.gmra.mxu2 %vm369_vm0, %v2304_v22 }
  0x95   : > { %1921 = vmatmul.msk.bf16.gmra.mxu0 %vm369_vm0, %v2310_v25 }
  0x96   : > { %1899 = vmatmul.msk.bf16.gmra.mxu3 %vm369_vm0, %v2302_v20  ;;  %v2316_v27 = vpop.f32.mrf.mxu2 }
  0x98   : > { %v410_v32 = vpop.f32.mrf.mxu1 }
  0x99   : > { %v2318_v28 = vpop.f32.mrf.mxu3 }
  0x9a   : > { %v405_v35 = vpop.f32.mrf.mxu0 }
  0x9e   : > { %v2326_v38 = vpop.f32.mrf.mxu2 }
  0xa0   : > { %v413_v41 = vpop.f32.mrf.mxu1 }
  0xa1   : > { %v2328_v39 = vpop.f32.mrf.mxu3 }
  0xa2   : > { %v862_v44 = vpop.f32.mrf.mxu0 }
  0xa3   : > { %1861 = vmatmul.msk.bf16.gmra.mxu1 %vm369_vm0, %v2330_v40  ;;  %1881 = vmatmul.msk.bf16.gmra.mxu2 %vm369_vm0, %v2332_v43 }
  0xa5   : > { %1994 = vmatmul.msk.bf16.vlgmr.msra.gmra.mxu0 %vm369_vm0, %v2228_v55 }
  0xa6   : > { %1900 = vmatmul.msk.bf16.gmra.mxu3 %vm369_vm0, %v2330_v40  ;;  %v2340_v45 = vpop.f32.mrf.mxu2 }
  0xa8   : > { %v2346_v47 = vpop.f32.mrf.mxu1 }
  0xa9   : > { %v2342_v46 = vpop.f32.mrf.mxu3 }
  0xaa   : > { %v864_v48 = vpop.f32.mrf.mxu0 }
  0xae   : > { %v2350_v52 = vpop.f32.mrf.mxu2 }
  0xb0   : > { %v488_v56 = vpop.f32.mrf.mxu1 }
  0xb1   : > { %v2352_v53 = vpop.f32.mrf.mxu3  ;;  %v489_v58 = vadd.f32 %v488_v56, %v403_v26 }
  0xb2   : > { %v867_v59 = vpop.f32.mrf.mxu0 }
  0xb3   : > { %1934 = vmatmul.msk.bf16.vlgmr.msra.gmra.mxu1 %vm369_vm0, %v2214_v49  ;;  %1954 = vmatmul.msk.bf16.vlgmr.msra.gmra.mxu2 %vm369_vm0, %v2226_v54  ;;  %v1490_v49 = vld [vmem:[%s2772_s4] sm:$0xff] }
  0xb4   : > { %1508 = vperm.xlu0 %2044, %v1490_v49  }
  0xb5   : > { %1995 = vmatmul.msk.bf16.gmra.mxu0 %vm369_vm0, %v2247_v62 }
  0xb6   : > { %1901 = vmatmul.msk.bf16.gmra.mxu3 %vm369_vm0, %v2354_v57  ;;  %v602_v63 = vpop.f32.mrf.mxu2 }
  0xb7   : > { %v642_v0 = vadd.f32 %v602_v63, %v489_v58 }
  0xb8   : > { %v490_v1 = vpop.f32.mrf.mxu1 }
  0xb9   : > { %v2362_v60 = vpop.f32.mrf.mxu3  ;;  %v491_v2 = vadd.f32 %v490_v1, %v405_v35 }
  0xba   : > { %v869_v54 = vpop.f32.mrf.mxu0 }
  0xbc   : > { %1513 = vperm.xlu0 %2044, %v1491_v16  }
  0xbe   : > { %v604_v5 = vpop.f32.mrf.mxu2 }
  0xbf   : > { %v643_v8 = vadd.f32 %v604_v5, %v491_v2 }
  0xc0   : > { %v493_v9 = vpop.f32.mrf.mxu1 }
  0xc1   : > { %v2369_v4 = vpop.f32.mrf.mxu3  ;;  %v494_v10 = vadd.f32 %v493_v9, %v408_v21 }
  0xc2   : > { %v872_v11 = vpop.f32.mrf.mxu0 }
  0xc3   : > { %1935 = vmatmul.msk.bf16.gmra.mxu1 %vm369_vm0, %v2228_v55  ;;  %1955 = vmatmul.msk.bf16.gmra.mxu2 %vm369_vm0, %v2245_v61  ;;  %v1492_v61 = vld [vmem:[%s2772_s4 + $0x10] sm:$0xff] }
  0xc4   : > { %1518 = vperm.xlu1 %2045, %v1492_v61  }
  0xc5   : > { %1996 = vmatmul.msk.bf16.gmra.mxu0 %vm369_vm0, %v2272_v7 }
  0xc6   : > { %1974 = vmatmul.msk.bf16.vlgmr.msra.gmra.mxu3 %vm369_vm0, %v2174_v29  ;;  %v607_v17 = vpop.f32.mrf.mxu2 }
  0xc7   : > { %v644_v19 = vadd.f32 %v607_v17, %v494_v10 }
  0xc8   : > { %v495_v55 = vpop.f32.mrf.mxu1 }
  0xc9   : > { %v732_v18 = vpop.f32.mrf.mxu3  ;;  %v496_v23 = vadd.f32 %v495_v55, %v410_v32 }
  0xca   : > { %v772_v21 = vadd.f32 %v732_v18, %v642_v0  ;;  %v874_v24 = vpop.f32.mrf.mxu0 }
  0xcc   : > { %v2385_v29 = vadd.f32 %v862_v44, %v772_v21  ;;  %v1493_v44 = vld [vmem:[%s2772_s4 + $0x18] sm:$0xff] }
  0xcd   : > { %1523 = vperm.xlu1 %2045, %v1493_v44  }
  0xce   : > { %v609_v26 = vpop.f32.mrf.mxu2 }
  0xcf   : > { %v645_v34 = vadd.f32 %v609_v26, %v496_v23  ;;  %v1497_v23 = vld [vmem:[%s2772_s4 + $0x38] sm:$0xff]  ;;  %v1495_v26 = vld [vmem:[%s2772_s4 + $0x28] sm:$0xff] }
  0xd0   : > { %v498_v36 = vpop.f32.mrf.mxu1 }
  0xd1   : > { %v734_v33 = vpop.f32.mrf.mxu3  ;;  %v499_v37 = vadd.f32 %v498_v36, %v413_v41 }
  0xd2   : > { %v773_v35 = vadd.f32 %v734_v33, %v643_v8  ;;  %v877_v32 = vpop.f32.mrf.mxu0 }
  0xd3   : > { %1936 = vmatmul.msk.bf16.gmra.mxu1 %vm369_vm0, %v2247_v62  ;;  %1956 = vmatmul.msk.bf16.gmra.mxu2 %vm369_vm0, %v2270_v6 }
  0xd4   : > { %v2387_v50 = vadd.f32 %v864_v48, %v773_v35 }
  0xd5   : > { %1997 = vmatmul.msk.bf16.gmra.mxu0 %vm369_vm0, %v2288_v13  ;;  %1543 = vperm.xlu1 %2045, %v1497_v23  }
  0xd6   : > { %1975 = vmatmul.msk.bf16.gmra.mxu3 %vm369_vm0, %v2144_v14  ;;  %v612_v51 = vpop.f32.mrf.mxu2 }
  0xd7   : > { %v646_v41 = vadd.f32 %v612_v51, %v499_v37 }
  0xd8   : > { %v500_v62 = vpop.f32.mrf.mxu1 }
  0xd9   : > { %v737_v56 = vpop.f32.mrf.mxu3  ;;  %v501_v58 = vadd.f32 %v500_v62, %v2346_v47 }
  0xda   : > { %v774_v48 = vadd.f32 %v737_v56, %v644_v19  ;;  %v879_v63 = vpop.f32.mrf.mxu0 }
  0xdc   : > { %v2401_v6 = vadd.f32 %v867_v59, %v774_v48  ;;  %v933_v48 = vld [vmem:[%s2130_s16 + $0x8a] sm:$0xff] }
  0xde   : > { %v614_v14 = vpop.f32.mrf.mxu2 }
  0xdf   : > { %v647_v1 = vadd.f32 %v614_v14, %v501_v58  ;;  %v1502_v14 = vld [vmem:[%s2772_s4 + $0x60] sm:$0xff] }
  0xe0   : > { %v503_v49 = vpop.f32.mrf.mxu1 }
  0xe1   : > { %v739_v0 = vpop.f32.mrf.mxu3  ;;  %v504_v59 = vadd.f32 %v503_v49, %v2316_v27  ;;  %v1505_v49 = vld [vmem:[%s2772_s4 + $0x78] sm:$0xff] }
  0xe2   : > { %v775_v2 = vadd.f32 %v739_v0, %v645_v34  ;;  %v2411_v47 = vpop.f32.mrf.mxu0 }
  0xe3   : > { %1937 = vmatmul.msk.bf16.gmra.mxu1 %vm369_vm0, %v2272_v7  ;;  %1957 = vmatmul.msk.bf16.gmra.mxu2 %vm369_vm0, %v2286_v12  ;;  %v1496_v7 = vld [vmem:[%s2772_s4 + $0x30] sm:$0xff] }
  0xe4   : > { %v2403_v3 = vadd.f32 %v869_v54, %v775_v2  ;;  %1538 = vperm.xlu0 %2044, %v1496_v7  }
  0xe5   : > { %1998 = vmatmul.msk.bf16.gmra.mxu0 %vm369_vm0, %v2304_v22 }
  0xe6   : > { %1976 = vmatmul.msk.bf16.gmra.mxu3 %vm369_vm0, %v2176_v30  ;;  %v617_v5 = vpop.f32.mrf.mxu2 }
  0xe7   : > { %v648_v54 = vadd.f32 %v617_v5, %v504_v59 }
  0xe8   : > { %v505_v10 = vpop.f32.mrf.mxu1 }
  0xe9   : > { %v742_v8 = vpop.f32.mrf.mxu3  ;;  %v506_v16 = vadd.f32 %v505_v10, %v2326_v38  ;;  %v1494_v38 = vld [vmem:[%s2772_s4 + $0x20] sm:$0xff] }
  0xea   : > { %v776_v9 = vadd.f32 %v742_v8, %v646_v41  ;;  %v2421_v30 = vpop.f32.mrf.mxu0  ;;  %1528 = vperm.xlu2 %2046, %v1494_v38   ;;  %v932_v41 = vld [vmem:[%s2130_s16 + $0x82] sm:$0xff] }
  0xeb   : > { %v941_v58 = vpack.c.bf16 %v933_v48, %v932_v41 }
  0xec   : > { %v2419_v12 = vadd.f32 %v872_v11, %v776_v9 }
  0xee   : > { %v619_v27 = vpop.f32.mrf.mxu2 }
  0xef   : > { %v649_v18 = vadd.f32 %v619_v27, %v506_v16  ;;  %v1503_v16 = vld [vmem:[%s2772_s4 + $0x68] sm:$0xff]  ;;  %v1322_v27 = vld [vmem:[%s2130_s16 + $0x92] sm:$0xff] }
  0xf0   : > { %v508_v21 = vpop.f32.mrf.mxu1 }
  0xf1   : > { %v744_v17 = vpop.f32.mrf.mxu3 }
  0xf2   : > { %v777_v19 = vadd.f32 %v744_v17, %v647_v1  ;;  %v2432_v11 = vpop.f32.mrf.mxu0  ;;  %1533 = vperm.xlu2 %2046, %v1495_v26   ;;  %v1323_v17 = vld [vmem:[%s2130_s16 + $0x9a] sm:$0xff] }
  0xf3   : > { %1938 = vmatmul.msk.bf16.gmra.mxu1 %vm369_vm0, %v2288_v13  ;;  %1958 = vmatmul.msk.bf16.gmra.mxu2 %vm369_vm0, %v2302_v20 }
  0xf4   : > { %v2424_v55 = vadd.f32 %v874_v24, %v777_v19  ;;  %v1499_v24 = vld [vmem:[%s2772_s4 + $0x48] sm:$0xff] }
  0xf5   : > { %1999 = vmatmul.msk.bf16.gmra.mxu0 %vm369_vm0, %v2332_v43  ;;  %1553 = vperm.xlu0 %2044, %v1499_v24  }
  0xf6   : > { %1977 = vmatmul.msk.bf16.gmra.mxu3 %vm369_vm0, %v2146_v15  ;;  %v622_v61 = vpop.f32.mrf.mxu2 }
  0xf8   : > { %v510_v20 = vpop.f32.mrf.mxu1 }
  0xf9   : > { %v747_v13 = vpop.f32.mrf.mxu3  ;;  %v511_v35 = vadd.f32 %v510_v20, %v2350_v52 }
  0xfa   : > { %v778_v15 = vadd.f32 %v747_v13, %v648_v54  ;;  %v2450_v34 = vpop.f32.mrf.mxu0  ;;  %v1062_v13 = vld [vmem:[%s2130_s16 + $0x90] sm:$0xff] }
  0xfc   : > { %v2448_v33 = vadd.f32 %v877_v32, %v778_v15  ;;  %v509_v32 = vadd.f32 %v508_v21, %v2340_v45 }
  0xfd   : > { %1568 = vperm.xlu0 %2044, %v1502_v14  }
  0xfe   : > { %v624_v36 = vpop.f32.mrf.mxu2 }
  0xff   : > { %v651_v44 = vadd.f32 %v624_v36, %v511_v35 }
 0x100   : > { %v513_v56 = vpop.f32.mrf.mxu1 }
 0x101   : > { %v749_v37 = vpop.f32.mrf.mxu3  ;;  %v514_v0 = vadd.f32 %v513_v56, %v2318_v28 }
 0x102   : > { %v779_v51 = vadd.f32 %v749_v37, %v649_v18  ;;  %v2464_v52 = vpop.f32.mrf.mxu0  ;;  %v1498_v18 = vld [vmem:[%s2772_s4 + $0x40] sm:$0xff] }
 0x103   : > { %1939 = vmatmul.msk.bf16.gmra.mxu1 %vm369_vm0, %v2304_v22  ;;  %1959 = vmatmul.msk.bf16.gmra.mxu2 %vm369_vm0, %v2330_v40 }
 0x104   : > { %v2455_v62 = vadd.f32 %v879_v63, %v779_v51  ;;  %v650_v63 = vadd.f32 %v622_v61, %v509_v32  ;;  %1548 = vperm.xlu2 %2046, %v1498_v18  }
 0x105   : > { %2000 = vmatmul.msk.bf16.gmra.mxu0 %vm369_vm0, %v941_v58  ;;  %1583 = vperm.xlu0 %2044, %v1505_v49  }
 0x106   : > { %1978 = vmatmul.msk.bf16.gmra.mxu3 %vm369_vm0, %v2178_v31  ;;  %v627_v22 = vpop.f32.mrf.mxu2  ;;  %v1500_v31 = vld [vmem:[%s2772_s4 + $0x50] sm:$0xff] }
 0x107   : > { %v652_v45 = vadd.f32 %v627_v22, %v514_v0  ;;  %1558 = vperm.xlu1 %2045, %v1500_v31   ;;  %v1193_v0 = vld [vmem:[%s2130_s16 + $0x99] sm:$0xff] }
 0x108   : > { %v515_v40 = vpop.f32.mrf.mxu1 }
 0x109   : > { %v752_v1 = vpop.f32.mrf.mxu3  ;;  %v516_v5 = vadd.f32 %v515_v40, %v2328_v39  ;;  %v1331_v39 = vpack.c.bf16 %v1323_v17, %v1322_v27 }
 0x10a   : > { %v780_v2 = vadd.f32 %v752_v1, %v650_v63  ;;  %v2480_v59 = vpop.f32.mrf.mxu0 }
 0x10c   : > { %v2478_v28 = vadd.f32 %v2411_v47, %v780_v2 }
 0x10e   : > { %v629_v8 = vpop.f32.mrf.mxu2 }
 0x10f   : > { %v653_v9 = vadd.f32 %v629_v8, %v516_v5  ;;  %1573 = vperm.xlu1 %2045, %v1503_v16   ;;  %v1643_v16 = vld [vmem:[%s2773_s5 + $0x18] sm:$0xff] }
 0x110   : > { %v518_v7 = vpop.f32.mrf.mxu1  ;;  %1659 = vmatpush.msrb.mxu1 %v1643_v16  ;;  %v1641_v16 = vld [vmem:[%s2773_s5 + $0x8] sm:$0xff] }
 0x111   : > { %v754_v54 = vpop.f32.mrf.mxu3 }
 0x112   : > { %v781_v10 = vadd.f32 %v754_v54, %v651_v44  ;;  %v897_v19 = vpop.f32.mrf.mxu0  ;;  %v1501_v44 = vld [vmem:[%s2772_s4 + $0x58] sm:$0xff] }
 0x113   : > { %1940 = vmatmul.msk.bf16.gmra.mxu1 %vm369_vm0, %v2332_v43  ;;  %1960 = vmatmul.msk.bf16.gmra.mxu2 %vm369_vm0, %v2354_v57 }
 0x114   : > { %v2489_v47 = vadd.f32 %v2421_v30, %v781_v10  ;;  %v519_v30 = vadd.f32 %v518_v7, %v2342_v46  ;;  %1563 = vperm.xlu2 %2046, %v1501_v44  }
 0x115   : > { %2001 = vmatmul.msk.bf16.gmra.mxu0 %vm369_vm0, %v1331_v39 }
 0x116   : > { %1979 = vmatmul.msk.bf16.gmra.mxu3 %vm369_vm0, %v2202_v42  ;;  %v632_v21 = vpop.f32.mrf.mxu2  ;;  %v1063_v42 = vld [vmem:[%s2130_s16 + $0x98] sm:$0xff] }
 0x117   : > { %v654_v43 = vadd.f32 %v632_v21, %v519_v30  ;;  %v1071_v36 = vpack.c.bf16 %v1063_v42, %v1062_v13 }
 0x118   : > { %v520_v61 = vpop.f32.mrf.mxu1 }
 0x119   : > { %v757_v38 = vpop.f32.mrf.mxu3  ;;  %v521_v15 = vadd.f32 %v520_v61, %v2352_v53 }
 0x11a   : > { %v782_v23 = vadd.f32 %v757_v38, %v652_v45  ;;  %v899_v37 = vpop.f32.mrf.mxu0 }
 0x11c   : > { %v2503_v57 = vadd.f32 %v2432_v11, %v782_v23 }
 0x11e   : > { %v634_v20 = vpop.f32.mrf.mxu2 }
 0x11f   : > { %v655_v26 = vadd.f32 %v634_v20, %v521_v15 }
 0x120   : > { %v523_v46 = vpop.f32.mrf.mxu1 }
 0x121   : > { %v759_v24 = vpop.f32.mrf.mxu3  ;;  %v524_v53 = vadd.f32 %v523_v46, %v2362_v60 }
 0x122   : > { %v783_v35 = vadd.f32 %v759_v24, %v653_v9  ;;  %v1382_v14 = vpop.f32.mrf.mxu0 }
 0x123   : > { %1941 = vmatmul.msk.bf16.gmra.mxu1 %vm369_vm0, %v941_v58  ;;  %1961 = vmatmul.msk.bf16.gmra.mxu2 %vm369_vm0, %v1071_v36  ;;  %v1192_v58 = vld [vmem:[%s2130_s16 + $0x91] sm:$0xff] }
 0x124   : > { %v2512_v11 = vadd.f32 %v2450_v34, %v783_v35  ;;  %v1504_v34 = vld [vmem:[%s2772_s4 + $0x70] sm:$0xff]  ;;  %v1201_v40 = vpack.c.bf16 %v1193_v0, %v1192_v58 }
 0x125   : > { %1578 = vperm.xlu2 %2046, %v1504_v34  }
 0x126   : > { %1980 = vmatmul.msk.bf16.gmra.mxu3 %vm369_vm0, %v2310_v25  ;;  %v637_v51 = vpop.f32.mrf.mxu2 }
 0x127   : > { %v656_v41 = vadd.f32 %v637_v51, %v524_v53 }
 0x128   : > { %v525_v32 = vpop.f32.mrf.mxu1 }
 0x129   : > { %v762_v56 = vpop.f32.mrf.mxu3  ;;  %v526_v25 = vadd.f32 %v525_v32, %v2369_v4 }
 0x12a   : > { %v784_v48 = vadd.f32 %v762_v56, %v654_v43 }
 0x12c   : > { %v2523_v63 = vadd.f32 %v2464_v52, %v784_v48  ;;  %v1384_v52 = vpop.f32.mrf.mxu0 }
 0x12e   : > { %v639_v22 = vpop.f32.mrf.mxu2 }
 0x12f   : > { %v657_v1 = vadd.f32 %v639_v22, %v526_v25 }
 0x130   : > { %v992_v2 = vpop.f32.mrf.mxu1 }
 0x131   : > { %v764_v60 = vpop.f32.mrf.mxu3  ;;  %v1032_v31 = vadd.f32 %v992_v2, %v2385_v29 }
 0x132   : > { %v785_v45 = vadd.f32 %v764_v60, %v655_v26 }
 0x134   : > { %v2530_v49 = vadd.f32 %v2480_v59, %v785_v45  ;;  %v1387_v29 = vpop.f32.mrf.mxu0 }
 0x136   : > { %1981 = vmatmul.msk.bf16.gmra.mxu3 %vm369_vm0, %v1201_v40  ;;  %v1122_v8 = vpop.f32.mrf.mxu2 }
 0x137   : > { %v1162_v9 = vadd.f32 %v1122_v8, %v1032_v31 }
 0x138   : > { %v994_v10 = vpop.f32.mrf.mxu1 }
 0x139   : > { %v767_v5 = vpop.f32.mrf.mxu3  ;;  %v1033_v4 = vadd.f32 %v994_v10, %v2387_v50 }
 0x13a   : > { %v786_v54 = vadd.f32 %v767_v5, %v656_v41 }
 0x13c   : > { %v2534_v7 = vadd.f32 %v897_v19, %v786_v54  ;;  %v1389_v61 = vpop.f32.mrf.mxu0 }
 0x13e   : > { %v1124_v27 = vpop.f32.mrf.mxu2 }
 0x13f   : > { %v1163_v39 = vadd.f32 %v1124_v27, %v1033_v4 }
 0x140   : > { %v997_v18 = vpop.f32.mrf.mxu1 }
 0x141   : > { %v769_v59 = vpop.f32.mrf.mxu3  ;;  %v1034_v30 = vadd.f32 %v997_v18, %v2401_v6 }
 0x142   : > { %v787_v17 = vadd.f32 %v769_v59, %v657_v1 }
 0x144   : > { %v2540_v21 = vadd.f32 %v899_v37, %v787_v17  ;;  %v1392_v36 = vpop.f32.mrf.mxu0 }
 0x146   : > { %v1127_v38 = vpop.f32.mrf.mxu2 }
 0x147   : > { %v1164_v50 = vadd.f32 %v1127_v38, %v1034_v30 }
 0x148   : > { %v999_v23 = vpop.f32.mrf.mxu1 }
 0x149   : > { %v1252_v43 = vpop.f32.mrf.mxu3  ;;  %v1035_v13 = vadd.f32 %v999_v23, %v2403_v3  ;;  %v1642_v3 = vld [vmem:[%s2773_s5 + $0x10] sm:$0xff] }
 0x14a   : > { %v1292_v19 = vadd.f32 %v1252_v43, %v1162_v9  ;;  %1660 = vmatpush.msrb.mxu1 %v1642_v3 }
 0x14c   : > { %v2543_v42 = vadd.f32 %v1382_v14, %v1292_v19  ;;  %v1394_v48 = vpop.f32.mrf.mxu0  ;;  %1661 = vmatpush.msrb.mxu1 %v1641_v16 }
 0x14e   : > { %v1129_v15 = vpop.f32.mrf.mxu2 }
 0x14f   : > { %v1165_v24 = vadd.f32 %v1129_v15, %v1035_v13  ;;  %v2573_v15 = vld [vmem:[%s2771_s3] ss:$0 sm:$0xff] }
 0x150   : > { %v1002_v35 = vpop.f32.mrf.mxu1 }
 0x151   : > { %v1254_v20 = vpop.f32.mrf.mxu3  ;;  %v1036_v46 = vadd.f32 %v1002_v35, %v2419_v12 }
 0x152   : > { %v1293_v26 = vadd.f32 %v1254_v20, %v1163_v39  ;;  %v2575_v20 = vpop.permute.xlu2 %1528 }
 0x154   : > { %v1423_v6 = vadd.f32 %v1384_v52, %v1293_v26  ;;  %v2549_v12 = vpop.f32.mrf.mxu0 }
 0x156   : > { %v1132_v37 = vpop.f32.mrf.mxu2 }
 0x157   : > { %v1166_v53 = vadd.f32 %v1132_v37, %v1036_v46 }
 0x158   : > { %v1004_v56 = vpop.f32.mrf.mxu1 }
 0x159   : > { %v1257_v44 = vpop.f32.mrf.mxu3  ;;  %v1037_v23 = vadd.f32 %v1004_v56, %v2424_v55  ;;  %v1443_v55 = vadd.f32 %v2573_v15, %v1423_v6 }
 0x15a   : > { %v1294_v51 = vadd.f32 %v1257_v44, %v1164_v50  ;;  %v1509_v50 = vpop.permute.xlu0 %1508  ;;  %v1442_v44 = vadd.f32 %v2573_v15, %v2543_v42  ;;  %v1534_v16 = vpop.permute.xlu2 %1533 }
 0x15c   : > { %v1424_v41 = vadd.f32 %v1387_v29, %v1294_v51  ;;  %v2551_v31 = vpop.f32.mrf.mxu0  ;;  %v1458_v51 = vld [vmem:[%s2583_s27] sm:$0xff] }
 0x15e   : > { %v1134_v32 = vpop.f32.mrf.mxu2  ;;  %v1444_v56 = vadd.f32 %v2573_v15, %v1424_v41  ;;  %v2603_v41 = vadd.f32 %v1458_v51, %v1442_v44 }
 0x160   : > { %v1007_v58 = vpop.f32.mrf.mxu1 }
 0x161   : > { %v1259_v14 = vpop.f32.mrf.mxu3  ;;  %v1038_v26 = vadd.f32 %v1007_v58, %v2448_v33 }
 0x162   : > { %v1295_v34 = vadd.f32 %v1259_v14, %v1165_v24  ;;  %v1167_v24 = vadd.f32 %v1134_v32, %v1037_v23  ;;  %v1460_v32 = vld [vmem:[%s2583_s27 + $0x10] sm:$0xff]  ;;  %v1514_v58 = vpop.permute.xlu0 %1513 }
 0x164   : > { %v1425_v0 = vadd.f32 %v1389_v61, %v1295_v34  ;;  %v2553_v54 = vpop.f32.mrf.mxu0  ;;  %v1519_v61 = vpop.permute.xlu1 %1518 }
 0x166   : > { %v1137_v25 = vpop.f32.mrf.mxu2 }
 0x167   : > { %v1168_v46 = vadd.f32 %v1137_v25, %v1038_v26  ;;  %v1445_v25 = vadd.f32 %v2573_v15, %v1425_v0 }
 0x168   : > { %v1009_v1 = vpop.f32.mrf.mxu1 }
 0x169   : > { %v1262_v22 = vpop.f32.mrf.mxu3  ;;  %v1039_v33 = vadd.f32 %v1009_v1, %v2455_v62  ;;  %v1640_v62 = vld [vmem:[%s2773_s5] sm:$0xff]  ;;  %v1461_v1 = vld [vmem:[%s2583_s27 + $0x18] sm:$0xff] }
 0x16a   : > { %v1296_v60 = vadd.f32 %v1262_v22, %v1166_v53  ;;  %v1459_v53 = vld [vmem:[%s2583_s27 + $0x8] sm:$0xff]  ;;  %1662 = vmatpush.msrb.mxu1 %v1640_v62 }
 0x16b   : > { %v2594_v6 = vadd.f32 %v1459_v53, %v1443_v55  ;;  %v1586_v53 = vmul.f32 %v1509_v50, %v2603_v41  ;;  %v1539_v50 = vpop.permute.xlu0 %1538 }
 0x16c   : > { %v1426_v45 = vadd.f32 %v1392_v36, %v1296_v60  ;;  %v2558_v29 = vpop.f32.mrf.mxu0  ;;  %v1524_v0 = vpop.permute.xlu1 %1523 }
 0x16e   : > { %v1139_v2 = vpop.f32.mrf.mxu2 }
 0x16f   : > { %v1169_v14 = vadd.f32 %v1139_v2, %v1039_v33  ;;  %v1464_v33 = vld [vmem:[%s2583_s27 + $0x30] sm:$0xff] }
 0x170   : > { %v1012_v52 = vpop.f32.mrf.mxu1 }
 0x171   : > { %v1264_v40 = vpop.f32.mrf.mxu3  ;;  %v1040_v34 = vadd.f32 %v1012_v52, %v2478_v28 }
 0x172   : > { %v1297_v36 = vadd.f32 %v1264_v40, %v1167_v24  ;;  %v2606_v40 = vadd.f32 %v1460_v32, %v1444_v56 }
 0x174   : > { %v2560_v18 = vpop.f32.mrf.mxu0  ;;  %v1427_v22 = vadd.f32 %v1394_v48, %v1297_v36  ;;  %v1446_v48 = vadd.f32 %v2573_v15, %v1426_v45  ;;  %v1463_v45 = vld [vmem:[%s2583_s27 + $0x28] sm:$0xff] }
 0x176   : > { %v1142_v5 = vpop.f32.mrf.mxu2  ;;  %v1447_v26 = vadd.f32 %v2573_v15, %v1427_v22 }
 0x177   : > { %v1170_v2 = vadd.f32 %v1142_v5, %v1040_v34  ;;  %v1587_v5 = vmul.f32 %v1514_v58, %v2594_v6  ;;  %v1544_v34 = vpop.permute.xlu1 %1543  ;;  %v1465_v58 = vld [vmem:[%s2583_s27 + $0x38] sm:$0xff] }
 0x178   : > { %v1014_v9 = vpop.f32.mrf.mxu1 }
 0x179   : > { %v1267_v8 = vpop.f32.mrf.mxu3  ;;  %v1041_v42 = vadd.f32 %v1014_v9, %v2489_v47  ;;  %v1462_v9 = vld [vmem:[%s2583_s27 + $0x20] sm:$0xff] }
 0x17a   : > { %v1298_v3 = vadd.f32 %v1267_v8, %v1168_v46 }
 0x17c   : > { %v2566_v19 = vpop.f32.mrf.mxu0  ;;  %v1428_v47 = vadd.f32 %v2549_v12, %v1298_v3 }
 0x17e   : > { %v1144_v10 = vpop.f32.mrf.mxu2 }
 0x17f   : > { %v1171_v52 = vadd.f32 %v1144_v10, %v1041_v42 }
 0x180   : > { %v1017_v59 = vpop.f32.mrf.mxu1 }
 0x181   : > { %v1269_v4 = vpop.f32.mrf.mxu3  ;;  %v1042_v23 = vadd.f32 %v1017_v59, %v2503_v57  ;;  %v1588_v57 = vmul.f32 %v1519_v61, %v2606_v40  ;;  %v2621_v59 = vadd.f32 %v1462_v9, %v1446_v48 }
 0x182   : > { %v1299_v28 = vadd.f32 %v1269_v4, %v1169_v14  ;;  %v2613_v4 = vadd.f32 %v1461_v1, %v1445_v25  ;;  %v1549_v25 = vpop.permute.xlu2 %1548  ;;  %v1466_v1 = vld [vmem:[%s2583_s27 + $0x40] sm:$0xff] }
 0x184   : > { %v2598_v60 = vpop.f32.mrf.mxu0  ;;  %v1429_v12 = vadd.f32 %v2551_v31, %v1299_v28 }
 0x186   : > { %v1147_v17 = vpop.f32.mrf.mxu2  ;;  %v1449_v3 = vadd.f32 %v2573_v15, %v1429_v12 }
 0x187   : > { %v1172_v10 = vadd.f32 %v1147_v17, %v1042_v23  ;;  %v1589_v17 = vmul.f32 %v1524_v0, %v2613_v4 }
 0x188   : > { %v1019_v30 = vpop.f32.mrf.mxu1  ;;  %v2649_v48 = vadd.f32 %v1465_v58, %v1449_v3 }
 0x189   : > { %v1272_v27 = vpop.f32.mrf.mxu3  ;;  %v1043_v44 = vadd.f32 %v1019_v30, %v2512_v11  ;;  %v1603_v11 = vsel %vm369_vm0, %v1587_v5, 0.0  ;;  %v2631_v30 = vadd.f32 %v1463_v45, %v1447_v26  ;;  %v1607_v0 = vsel %vm369_vm0, %v1589_v17, 0.0 }
 0x18a   : > { %v1300_v24 = vadd.f32 %v1272_v27, %v1170_v2  ;;  %v1448_v27 = vadd.f32 %v2573_v15, %v1428_v47  ;;  %v1467_v47 = vld [vmem:[%s2583_s27 + $0x48] sm:$0xff]  ;;  %v1593_v12 = vmul.f32 %v1544_v34, %v2649_v48 }
 0x18b   : > { %v1591_v62 = vmul.f32 %v1534_v16, %v2631_v30  ;;  %v1471_v34 = vld [vmem:[%s2583_s27 + $0x68] sm:$0xff] }
 0x18c   : > { %v1430_v51 = vadd.f32 %v2553_v54, %v1300_v24  ;;  %v2640_v14 = vadd.f32 %v1464_v33, %v1448_v27  ;;  %v1559_v33 = vpop.permute.xlu1 %1558 }
 0x18e   : > { %v2562_v38 = vpop.f32.mrf.mxu2  ;;  %v1592_v9 = vmul.f32 %v1539_v50, %v2640_v14 }
 0x190   : > { %v1022_v13 = vpop.f32.mrf.mxu1  ;;  %v1613_v27 = vsel %vm369_vm0, %v1592_v9, 0.0 }
 0x191   : > { %v1274_v39 = vpop.f32.mrf.mxu3  ;;  %v1044_v56 = vadd.f32 %v1022_v13, %v2523_v63  ;;  %v1602_v63 = vsel %vm369_vm0, %v1586_v53, 0.0  ;;  %v1590_v13 = vmul.f32 %v2575_v20, %v2621_v59 }
 0x192   : > { %v1301_v55 = vadd.f32 %v1274_v39, %v1171_v52  ;;  %v1173_v39 = vadd.f32 %v2562_v38, %v1043_v44  ;;  %v1604_v42 = vadd.f32 %v1603_v11, %v1602_v63 }
 0x193   : > { %v1609_v16 = vsel %vm369_vm0, %v1590_v13, 0.0 }
 0x194   : > { %v1431_v61 = vadd.f32 %v2558_v29, %v1301_v55  ;;  %v1414_v29 = vpop.f32.mrf.mxu0 }
 0x196   : > { %v1152_v35 = vpop.f32.mrf.mxu2  ;;  %v1451_v2 = vadd.f32 %v2573_v15, %v1431_v61  ;;  %v1470_v61 = vld [vmem:[%s2583_s27 + $0x60] sm:$0xff] }
 0x197   : > { %v1174_v32 = vadd.f32 %v1152_v35, %v1044_v56  ;;  %v1450_v35 = vadd.f32 %v2573_v15, %v1430_v51  ;;  %v1564_v56 = vpop.permute.xlu2 %1563 }
 0x198   : > { %v1024_v8 = vpop.f32.mrf.mxu1  ;;  %v2660_v45 = vadd.f32 %v1467_v47, %v1451_v2 }
 0x199   : > { %v2564_v43 = vpop.f32.mrf.mxu3  ;;  %v1045_v54 = vadd.f32 %v1024_v8, %v2530_v49  ;;  %v2655_v24 = vadd.f32 %v1466_v1, %v1450_v35 }
 0x19a   : > { %v1302_v31 = vadd.f32 %v2564_v43, %v1172_v10  ;;  %v1605_v43 = vsel %vm369_vm0, %v1588_v57, 0.0 }
 0x19b   : > { %v1594_v51 = vmul.f32 %v1549_v25, %v2655_v24 }
 0x19c   : > { %v1432_v49 = vadd.f32 %v2560_v18, %v1302_v31  ;;  %v1606_v18 = vadd.f32 %v1605_v43, %v1604_v42  ;;  %v1472_v42 = vld [vmem:[%s2583_s27 + $0x70] sm:$0xff] }
 0x19d   : > { %v1617_v58 = vsel %vm369_vm0, %v1594_v51, 0.0 }
 0x19e   : > { %v1154_v46 = vpop.f32.mrf.mxu2  ;;  %v1452_v5 = vadd.f32 %v2573_v15, %v1432_v49  ;;  %v1608_v55 = vadd.f32 %v1607_v0, %v1606_v18 }
 0x19f   : > { %v1175_v22 = vadd.f32 %v1154_v46, %v1045_v54  ;;  %v1611_v46 = vsel %vm369_vm0, %v1591_v62, 0.0  ;;  %v1668_v62 = vld [vmem:[%s2774_s6] sm:$0xf] }
 0x1a0   : > { %v1027_v20 = vpop.f32.mrf.mxu1  ;;  %v1610_v57 = vadd.f32 %v1609_v16, %v1608_v55  ;;  %2003 = vmatpush.msk.msrb.mxu2 %vm1673_vm1, %v1668_v62  ;;  %v1574_v16 = vpop.permute.xlu1 %1573 }
 0x1a1   : > { %v1279_v37 = vpop.f32.mrf.mxu3  ;;  %v1046_v44 = vadd.f32 %v1027_v20, %v2534_v7  ;;  %v1417_v7 = vpop.f32.mrf.mxu0 }
 0x1a2   : > { %v1303_v38 = vadd.f32 %v1279_v37, %v1173_v39  ;;  %v1612_v17 = vadd.f32 %v1611_v46, %v1610_v57  ;;  %v1473_v57 = vld [vmem:[%s2583_s27 + $0x78] sm:$0xff] }
 0x1a4   : > { %v1433_v52 = vadd.f32 %v2566_v19, %v1303_v38  ;;  %v1468_v19 = vld [vmem:[%s2583_s27 + $0x50] sm:$0xff]  ;;  %v1614_v43 = vadd.f32 %v1613_v27, %v1612_v17 }
 0x1a5   : > { %v2669_v39 = vadd.f32 %v1468_v19, %v1452_v5 }
 0x1a6   : > { %v1157_v23 = vpop.f32.mrf.mxu2  ;;  %v1453_v10 = vadd.f32 %v2573_v15, %v1433_v52 }
 0x1a7   : > { %v1176_v31 = vadd.f32 %v1157_v23, %v1046_v44 }
 0x1a8   : > { %v1029_v13 = vpop.f32.mrf.mxu1 }
 0x1a9   : > { %v1282_v36 = vpop.f32.mrf.mxu3  ;;  %v1047_v2 = vadd.f32 %v1029_v13, %v2540_v21  ;;  %v1419_v19 = vpop.f32.mrf.mxu0 }
 0x1aa   : > { %v1304_v37 = vadd.f32 %v1282_v36, %v1174_v32  ;;  %v1554_v36 = vpop.permute.xlu0 %1553  ;;  %v1615_v32 = vsel %vm369_vm0, %v1593_v12, 0.0 }
 0x1ab   : > { %v1595_v50 = vmul.f32 %v1554_v36, %v2660_v45  ;;  %v1616_v49 = vadd.f32 %v1615_v32, %v1614_v43  ;;  %v1579_v36 = vpop.permute.xlu2 %1578 }
 0x1ac   : > { %v1434_v26 = vadd.f32 %v2598_v60, %v1304_v37  ;;  %v1469_v60 = vld [vmem:[%s2583_s27 + $0x58] sm:$0xff] }
 0x1ad   : > { %v2675_v54 = vadd.f32 %v1469_v60, %v1453_v10  ;;  %v1618_v0 = vadd.f32 %v1617_v58, %v1616_v49 }
 0x1ae   : > { %v1454_v11 = vadd.f32 %v2573_v15, %v1434_v26  ;;  %v1159_v37 = vpop.f32.mrf.mxu2 }
 0x1af   : > { %v1597_v1 = vmul.f32 %v1564_v56, %v2675_v54  ;;  %v1177_v18 = vadd.f32 %v1159_v37, %v1047_v2 }
 0x1b0   : > { %v2681_v25 = vadd.f32 %v1470_v61, %v1454_v11 }
 0x1b1   : > { %v1284_v28 = vpop.f32.mrf.mxu3  ;;  %v1623_v21 = vsel %vm369_vm0, %v1597_v1, 0.0 }
 0x1b2   : > { %v1305_v8 = vadd.f32 %v1284_v28, %v1175_v22  ;;  %v1619_v22 = vsel %vm369_vm0, %v1595_v50, 0.0  ;;  %v1569_v47 = vpop.permute.xlu0 %1568 }
 0x1b3   : > { %v1620_v23 = vadd.f32 %v1619_v22, %v1618_v0 }
 0x1b4   : > { %v1435_v53 = vadd.f32 %v1414_v29, %v1305_v8  ;;  %v1596_v29 = vmul.f32 %v1559_v33, %v2669_v39  ;;  %v1598_v8 = vmul.f32 %v1569_v47, %v2681_v25 }
 0x1b6   : > { %v1455_v38 = vadd.f32 %v2573_v15, %v1435_v53  ;;  %v1621_v52 = vsel %vm369_vm0, %v1596_v29, 0.0  ;;  %v1625_v12 = vsel %vm369_vm0, %v1598_v8, 0.0 }
 0x1b7   : > { %v1622_v46 = vadd.f32 %v1621_v52, %v1620_v23 }
 0x1b8   : > { %v2690_v20 = vadd.f32 %v1471_v34, %v1455_v38 }
 0x1b9   : > { %v1287_v3 = vpop.f32.mrf.mxu3  ;;  %v1624_v53 = vadd.f32 %v1623_v21, %v1622_v46 }
 0x1ba   : > { %v1306_v63 = vadd.f32 %v1287_v3, %v1176_v31  ;;  %v1599_v26 = vmul.f32 %v1574_v16, %v2690_v20  ;;  %v1584_v31 = vpop.permute.xlu0 %1583 }
 0x1bb   : > { %v1626_v60 = vadd.f32 %v1625_v12, %v1624_v53 }
 0x1bc   : > { %v1436_v35 = vadd.f32 %v1417_v7, %v1306_v63  ;;  %v1627_v27 = vsel %vm369_vm0, %v1599_v26, 0.0 }
 0x1bd   : > { %v1628_v11 = vadd.f32 %v1627_v27, %v1626_v60 }
 0x1be   : > { %v1456_v28 = vadd.f32 %v2573_v15, %v1436_v35 }
 0x1c0   : > { %v2695_v9 = vadd.f32 %v1472_v42, %v1456_v28 }
 0x1c1   : > { %v1289_v5 = vpop.f32.mrf.mxu3 }
 0x1c2   : > { %v1307_v55 = vadd.f32 %v1289_v5, %v1177_v18  ;;  %v1600_v10 = vmul.f32 %v1579_v36, %v2695_v9 }
 0x1c4   : > { %v1437_v44 = vadd.f32 %v1419_v19, %v1307_v55  ;;  %v1629_v51 = vsel %vm369_vm0, %v1600_v10, 0.0 }
 0x1c5   : > { %v1630_v50 = vadd.f32 %v1629_v51, %v1628_v11 }
 0x1c6   : > { %v1457_v33 = vadd.f32 %v2573_v15, %v1437_v44 }
 0x1c8   : > { %v2705_v56 = vadd.f32 %v1473_v57, %v1457_v33 }
 0x1ca   : > { %v1601_v17 = vmul.f32 %v1584_v31, %v2705_v56 }
 0x1cc   : > { %v1631_v61 = vsel %vm369_vm0, %v1601_v17, 0.0 }
 0x1cd   : > { %v1632_v7 = vadd.f32 %v1631_v61, %v1630_v50 }
 0x1cf   : > { %v1633_v3 = vrot.slane %v1632_v7, 4 }
 0x1d1   : > { %v1634_v32 = vadd.f32 %v1633_v3, %v1632_v7 }
 0x1d3   : > { %v1635_v38 = vrot.slane %v1634_v32, 2 }
 0x1d5   : > { %v1636_v63 = vadd.f32 %v1635_v38, %v1634_v32 }
 0x1d7   : > { %v1637_v43 = vrot.slane %v1636_v63, 1 }
 0x1d9   : > { %v1638_v13 = vadd.f32 %v1637_v43, %v1636_v63 }
 0x1db   : > { %v1639_v15 = vmul.f32 0.015625, %v1638_v13 }
 0x1dd   : > { %2002 = vmatmul.msk.f32.vlgmr.msrb.gmra.mxu1 %vm369_vm0, %v1639_v15 }
 0x25a   : > { %v1664_v34 = vpop.f32.mrf.mxu1 }
 0x25b   : > { %v1667_v58 = vmax.f32 %v1664_v34, 0.0 }
 0x25d   : > { %2004 = vmatmul.msk.f32.vlgmr.msrb.gmra.mxu2 %vm1669_vm2, %v1667_v58 }
 0x2e0   : > { %v1694_v29 = vpop.f32.mrf.mxu2 }
 0x2e1   : > { %v2005_v35 = vmul.f32 -1.442695, %v1694_v29 }
 0x2e3   : > { %2048 = vpow2.f32 %v2005_v35 }
 0x2e9   : > { %v2049_v49 = vpop.eup %2048 }
 0x2ea   : > { %v1700_v22 = vadd.f32 1.0, %v2049_v49 }
 0x2ec   : > { %2050 = vrcp.f32 %v1700_v22  ;;  %v1712_v1 = vand.u32 2147483648, %v1700_v22  ;;  %v1710_v28 = vand.u32 2147483647, %v1700_v22  ;;  %vm1706_vm4 = vweird.f32 %v1700_v22 }
 0x2ee   : > { %v1713_v47 = vor.u32 1.1754944e-38, %v1712_v1  ;;  %vm1711_vm6 = vcmp.eq.f32.partialorder %v1710_v28, 8.507059e+37 }
 0x2f2   : > { %v2051_v37 = vpop.eup %2050 }
 0x2f3   : > { %v1702_v42 = vmul.f32 %v2051_v37, %v1700_v22  ;;  %vm1707_vm3 = vweird.f32 %v2051_v37 }
 0x2f4   : > { %vm1708_vm5 = vmor %vm1706_vm4, %vm1707_vm3 }
 0x2f5   : > { %v1703_v62 = vsub.f32 1.0, %v1702_v42 }
 0x2f7   : > { %v1704_v2 = vmul.f32 %v2051_v37, %v1703_v62 }
 0x2f9   : > { %v1705_v0 = vadd.f32 %v2051_v37, %v1704_v2 }
 0x2fb   : > { %v1709_v52 = vsel %vm1708_vm5, %v2051_v37, %v1705_v0 }
 0x2fc   : > { %v1714_v8 = vsel %vm1711_vm6, %v1713_v47, %v1709_v52 }
 0x2fd   : > { %v1716_v18 = vperm.slane %v1714_v8, 0 }
 0x2ff   : > { %v1717_v23 = vmul.f32 %v1716_v18, %v2603_v41  ;;  %v1718_v16 = vmul.f32 %v1716_v18, %v2594_v6  ;;  %v1719_v5 = vmul.f32 %v1716_v18, %v2606_v40  ;;  %v1720_v21 = vmul.f32 %v1716_v18, %v2613_v4 }
 0x300   : > { %v1721_v26 = vmul.f32 %v1716_v18, %v2621_v59  ;;  %v1722_v55 = vmul.f32 %v1716_v18, %v2631_v30  ;;  %v1723_v41 = vmul.f32 %v1716_v18, %v2640_v14  ;;  %v1724_v6 = vmul.f32 %v1716_v18, %v2649_v48 }
 0x301   : > { %1733 = vst.msk [vmem:[%s2715_s11] sm:$0xff] %vm369_vm0, %v1717_v23  ;;  %v1725_v40 = vmul.f32 %v1716_v18, %v2655_v24  ;;  %v1726_v4 = vmul.f32 %v1716_v18, %v2660_v45  ;;  %v1727_v59 = vmul.f32 %v1716_v18, %v2669_v39  ;;  %v1728_v30 = vmul.f32 %v1716_v18, %v2675_v54 }
 0x302   : > { %1734 = vst.msk [vmem:[%s2715_s11 + $0x8] sm:$0xff] %vm369_vm0, %v1718_v16  ;;  %v1729_v14 = vmul.f32 %v1716_v18, %v2681_v25  ;;  %v1730_v48 = vmul.f32 %v1716_v18, %v2690_v20  ;;  %v1731_v24 = vmul.f32 %v1716_v18, %v2695_v9  ;;  %v1732_v45 = vmul.f32 %v1716_v18, %v2705_v56 }
 0x303   : > { %1735 = vst.msk [vmem:[%s2715_s11 + $0x10] sm:$0xff] %vm369_vm0, %v1719_v5 }
 0x304   : > { %1736 = vst.msk [vmem:[%s2715_s11 + $0x18] sm:$0xff] %vm369_vm0, %v1720_v21 }
 0x305   : > { %1737 = vst.msk [vmem:[%s2715_s11 + $0x20] sm:$0xff] %vm369_vm0, %v1721_v26 }
 0x306   : > { %1738 = vst.msk [vmem:[%s2715_s11 + $0x28] sm:$0xff] %vm369_vm0, %v1722_v55 }
 0x307   : > { %1739 = vst.msk [vmem:[%s2715_s11 + $0x30] sm:$0xff] %vm369_vm0, %v1723_v41 }
 0x308   : > { %1740 = vst.msk [vmem:[%s2715_s11 + $0x38] sm:$0xff] %vm369_vm0, %v1724_v6 }
 0x309   : > { %1741 = vst.msk [vmem:[%s2715_s11 + $0x40] sm:$0xff] %vm369_vm0, %v1725_v40 }
 0x30a   : > { %1742 = vst.msk [vmem:[%s2715_s11 + $0x48] sm:$0xff] %vm369_vm0, %v1726_v4 }
 0x30b   : > { %1743 = vst.msk [vmem:[%s2715_s11 + $0x50] sm:$0xff] %vm369_vm0, %v1727_v59 }
 0x30c   : > { %1744 = vst.msk [vmem:[%s2715_s11 + $0x58] sm:$0xff] %vm369_vm0, %v1728_v30 }
 0x30d   : > { %1745 = vst.msk [vmem:[%s2715_s11 + $0x60] sm:$0xff] %vm369_vm0, %v1729_v14 }
 0x30e   : > { %1746 = vst.msk [vmem:[%s2715_s11 + $0x68] sm:$0xff] %vm369_vm0, %v1730_v48 }
 0x30f   : > { %1747 = vst.msk [vmem:[%s2715_s11 + $0x70] sm:$0xff] %vm369_vm0, %v1731_v24 }
 0x310   : > { %1748 = vst.msk [vmem:[%s2715_s11 + $0x78] sm:$0xff] %vm369_vm0, %v1732_v45 }
 0x311 PF: > { %s17_s24 = sadd.s32 1, %s2058_s24  }
 0x312   : > { %p14_p4 = scmp.ge.s32.totalorder %s17_s24, 4  }
 0x314   :  { %16 = sbr.rel (!%p14_p4) target bundleno = 1 (0x1), region = 89 }

</bundles_post_ra>
